<compile_context>
chip_gen: v6e
topology: v6e:2x2x1
jax: 0.10.0
libtpu: 0.0.40
codegen_flags: <defaults>
</compile_context>

<pallas_src>
import collections
import math
from functools import partial

import jax
import jax.numpy as jnp
from jax.experimental import pallas as pl
from jax.experimental.pallas import tpu as pltpu


# ------------------------------ kernel ------------------------------------ #
def _resblock_kernel(*refs, L, has_projection):
    """One batch tile per grid step.

    x_ref : (M, C_in_p)   M = bt * L rows (bt whole sequences flattened)
    w1    : (3, C_in_p, C_out_p)   conv1 weights with BN1 scale folded in
    w2    : (3, C_out_p, C_out_p)  conv2 weights with BN2 scale folded in
    ws    : (C_in_p, C_out_p)      1x1 shortcut weights (projection only)
    b1/b2/bs : (1, C_out_p)        folded BN shifts (f32)
    o_ref : (M, C_out_p)
    """
    if has_projection:
        x_ref, w1_ref, w2_ref, ws_ref, b1_ref, b2_ref, bs_ref, o_ref = refs
    else:
        x_ref, w1_ref, w2_ref, b1_ref, b2_ref, o_ref = refs

    x = x_ref[...]                       # (M, C_in_p), compute dtype
    M = x.shape[0]

    # Hoisted boundary masks: one (M, 1) iota + modulo per grid step, reused
    # by all four shifted operands (broadcast in the selects).
    pos = jax.lax.broadcasted_iota(jnp.int32, (M, 1), 0) % L
    not_first = pos != 0                 # rows that have a valid "previous"
    not_last = pos != (L - 1)            # rows that have a valid "next"

    def prev_rows(a):                    # a[g] -> a[g-1], 0 at sequence start
        return jnp.where(not_first, pltpu.roll(a, shift=1, axis=0), 0.0)

    def next_rows(a):                    # a[g] -> a[g+1], 0 at sequence end
        return jnp.where(not_last, pltpu.roll(a, shift=M - 1, axis=0), 0.0)

    dot = partial(jnp.dot, preferred_element_type=jnp.float32)

    # conv1 (k=3, pad=1) with BN1 scale folded into w1; then shift + ReLU.
    acc = dot(prev_rows(x), w1_ref[0])
    acc = acc + dot(x, w1_ref[1])
    acc = acc + dot(next_rows(x), w1_ref[2])
    h = jnp.maximum(acc + b1_ref[...], 0.0).astype(x.dtype)

    # conv2 (k=3, pad=1) with BN2 folded; h never leaves vregs (no scratch).
    acc = dot(prev_rows(h), w2_ref[0])
    acc = acc + dot(h, w2_ref[1])
    acc = acc + dot(next_rows(h), w2_ref[2])
    out = acc + b2_ref[...]

    # Shortcut: folded 1x1 conv + BN when channels change, identity otherwise.
    if has_projection:
        out = out + dot(x, ws_ref[...]) + bs_ref[...]
    else:
        out = out + x.astype(jnp.float32)

    o_ref[...] = jnp.maximum(out, 0.0).astype(o_ref.dtype)


# --------------------------- hardware queries ------------------------------ #
def _device_kind():
    try:
        return jax.devices()[0].device_kind.lower()
    except Exception:
        return ""


def _tpu_vmem_capacity():
    try:
        return int(pltpu.get_tpu_info().vmem_capacity_bytes)
    except Exception:
        return (64 << 20) if "v7" in _device_kind() else (128 << 20)


def _default_compute_dtype():
    # bf16-native MXU/VPU on v6e/v7x; keep f32 on v5e and unknown chips.
    kind = _device_kind()
    if ("v6" in kind) or ("v7" in kind):
        return jnp.bfloat16
    return jnp.float32


# ------------------------------ helpers ------------------------------------ #
def _round_up(n, m):
    return ((n + m - 1) // m) * m


def _pad_axis_to(a, axis, size):
    pad = size - a.shape[axis]
    if pad <= 0:
        return a
    widths = [(0, 0)] * a.ndim
    widths[axis] = (0, pad)
    return jnp.pad(a, widths)


def _const_spec(shape, single_buffer):
    rank = len(shape)
    idx = lambda *_: (0,) * rank
    if single_buffer:
        # Constant index_map -> DMA'd once; single-buffer to halve residency.
        return pl.BlockSpec(shape, idx, pipeline_mode=pl.Buffered(1))
    return pl.BlockSpec(shape, idx)


_BlockConfig = collections.namedtuple(
    "_BlockConfig",
    ["C_in", "C_out", "C_in_p", "C_out_p", "has_projection",
     "compute_dtype", "out_dtype", "target_rows", "vmem_cap",
     "single_buffer_consts"])


def _plan_tiles(N, L, cfg):
    """Generation-aware batch-block size, padded batch, and VMEM limit."""
    item = jnp.dtype(cfg.compute_dtype).itemsize
    out_item = jnp.dtype(cfg.out_dtype).itemsize
    C_in_p, C_out_p = cfg.C_in_p, cfg.C_out_p

    w_elems = 3 * C_in_p * C_out_p + 3 * C_out_p * C_out_p
    if cfg.has_projection:
        w_elems += C_in_p * C_out_p
    const_mult = 1 if cfg.single_buffer_consts else 2
    const_bytes = const_mult * (
        w_elems * item + (3 if cfg.has_projection else 2) * C_out_p * 4)

    # Per-row VMEM: double-buffered input & output blocks plus margin for
    # in-kernel f32 temporaries (accumulator / rolled copies).
    per_row = (2 * C_in_p * item + 2 * C_out_p * out_item
               + 2 * max(C_in_p, C_out_p) * 4)

    vmem_cap = cfg.vmem_cap
    usable = int(vmem_cap * 0.8) - (8 << 20)     # headroom for Mosaic scratch
    max_rows = max(8, (usable - const_bytes) // per_row)

    target_rows = cfg.target_rows or (1024 if vmem_cap >= (96 << 20) else 512)

    m = 8 // math.gcd(L, 8)              # smallest bt with (bt * L) % 8 == 0

    def rdown(v):
        return max(m, (v // m) * m)

    bt = rdown(max(1, target_rows // max(L, 1)))
    bt = min(bt, rdown(max(1, max_rows // max(L, 1))))
    # Keep >= ~8 grid steps when the batch allows (megacore + DMA overlap).
    if N >= 8 * m:
        bt = min(bt, rdown(N // 8))
    bt = min(bt, _round_up(N, m))        # never pad batch beyond one block
    bt = max(bt, m)

    N_pad = _round_up(N, bt)
    M_blk = bt * L

    cap_limit = vmem_cap - (12 << 20)    # ~52 MiB on v7x, ~116 MiB on v5e/v6e
    need = const_bytes + M_blk * per_row + (4 << 20)
    vmem_limit = int(min(max(need, 32 << 20), cap_limit))
    return bt, M_blk, N_pad, vmem_limit


# --------------------------- pallas_call driver ----------------------------- #
def _apply_nlc(x_nlc, *consts, cfg):
    """x_nlc: (N, L, C_in). Returns (N, L, C_out) in cfg.out_dtype."""
    N, L, C_in = x_nlc.shape
    bt, M_blk, N_pad, vmem_limit = _plan_tiles(N, L, cfg)

    x = x_nlc.astype(cfg.compute_dtype)
    if N_pad > N:                        # zero-pad whole sequences; discarded
        x = jnp.pad(x, ((0, N_pad - N), (0, 0), (0, 0)))
    x = x.reshape(N_pad * L, C_in)
    if cfg.C_in_p > C_in:
        x = jnp.pad(x, ((0, 0), (0, cfg.C_in_p - C_in)))

    grid = (N_pad // bt,)
    in_specs = [pl.BlockSpec((M_blk, cfg.C_in_p), lambda n: (n, 0))]
    in_specs += [_const_spec(c.shape, cfg.single_buffer_consts)
                 for c in consts]

    out_flat = pl.pallas_call(
        partial(_resblock_kernel, L=L, has_projection=cfg.has_projection),
        out_shape=jax.ShapeDtypeStruct((N_pad * L, cfg.C_out_p),
                                       cfg.out_dtype),
        grid_spec=pltpu.PrefetchScalarGridSpec(
            num_scalar_prefetch=0,
            grid=grid,
            in_specs=in_specs,
            out_specs=pl.BlockSpec((M_blk, cfg.C_out_p), lambda n: (n, 0)),
        ),
        compiler_params=pltpu.CompilerParams(
            dimension_semantics=("parallel",),
            vmem_limit_bytes=vmem_limit),
    )(x, *consts)

    return out_flat[:N * L, :cfg.C_out].reshape(N, L, cfg.C_out)


# ------------------------------ module class -------------------------------- #
class ResidualBlockPallas:
    """Eval-mode ResidualBlock. Folds BN into conv weights once at init."""

    def __init__(self, params, *, stride=1, compute_dtype=None,
                 out_dtype=None, target_rows=None):
        if stride != 1:
            # TODO(synk): strided Conv1d not implemented.
            raise NotImplementedError("stride != 1 is not supported")

        compute_dtype = compute_dtype or _default_compute_dtype()
        out_dtype = out_dtype or compute_dtype
        C_in = params["w1"].shape[1]
        C_out = params["w1"].shape[2]
        has_projection = "ws" in params

        self._cfg = _BlockConfig(
            C_in=C_in, C_out=C_out,
            C_in_p=_round_up(C_in, 128), C_out_p=_round_up(C_out, 128),
            has_projection=has_projection,
            compute_dtype=compute_dtype, out_dtype=out_dtype,
            target_rows=target_rows, vmem_cap=_tpu_vmem_capacity(),
            single_buffer_consts=True)

        self.consts = self._fold(params)         # folded/padded/cast ONCE
        self._jitted = jax.jit(partial(_apply_nlc, cfg=self._cfg))

    def _fold(self, params):
        cfg = self._cfg

        def fold(w, scale, cin_p):
            wf = w * scale.reshape((1,) * (w.ndim - 1) + (-1,))
            wf = _pad_axis_to(wf, w.ndim - 2, cin_p)        # input channels
            wf = _pad_axis_to(wf, w.ndim - 1, cfg.C_out_p)  # output channels
            return jnp.asarray(wf, cfg.compute_dtype)

        def pad_b(b):
            return _pad_axis_to(jnp.asarray(b, jnp.float32), 1, cfg.C_out_p)

        w1 = fold(params["w1"], params["s1"], cfg.C_in_p)
        w2 = fold(params["w2"], params["s2"], cfg.C_out_p)
        b1, b2 = pad_b(params["b1"]), pad_b(params["b2"])
        if cfg.has_projection:
            ws = fold(params["ws"], params["ss"], cfg.C_in_p)
            bs = pad_b(params["bs"])
            return (w1, w2, ws, b1, b2, bs)
        return (w1, w2, b1, b2)

    def apply_nlc(self, x_nlc):
        """Channels-last entry point: (N, L, C_in) -> (N, L, C_out)."""
        try:
            return self._jitted(x_nlc, *self.consts)
        except Exception:
            if self._cfg.single_buffer_consts:
                # Fallback if this jax build rejects single-buffered specs.
                self._cfg = self._cfg._replace(single_buffer_consts=False)
                self._jitted = jax.jit(partial(_apply_nlc, cfg=self._cfg))
                return self._jitted(x_nlc, *self.consts)
            raise

    def __call__(self, x_ncl):
        """PyTorch layout: (N, C_in, L) -> (N, C_out, L)."""
        out = self.apply_nlc(jnp.transpose(x_ncl, (0, 2, 1)))
        return jnp.transpose(out, (0, 2, 1))


def residual_block_pallas(x_ncl, params, *, stride=1, compute_dtype=None,
                          out_dtype=None):
    """One-shot functional wrapper (folds params per call; prefer the class)."""
    block = ResidualBlockPallas(params, stride=stride,
                                compute_dtype=compute_dtype,
                                out_dtype=out_dtype)
    return block(x_ncl)


# ------------------------- pure-JAX reference ------------------------------ #
def _conv1d_ref(x_nlc, w):  # w: (3, Cin, Cout), padding=1, stride=1
    L = x_nlc.shape[1]
    xp = jnp.pad(x_nlc, ((0, 0), (1, 1), (0, 0)))
    return sum(jnp.einsum("nlc,cd->nld", xp[:, k:k + L, :], w[k])
               for k in range(3))


def residual_block_ref(x_ncl, params):
    x = jnp.transpose(x_ncl, (0, 2, 1)).astype(jnp.float32)
    h = jnp.maximum(_conv1d_ref(x, params["w1"]) * params["s1"] + params["b1"],
                    0.0)
    out = _conv1d_ref(h, params["w2"]) * params["s2"] + params["b2"]
    if "ws" in params:
        sc = (jnp.einsum("nlc,cd->nld", x, params["ws"]) * params["ss"]
              + params["bs"])
    else:
        sc = x
    out = jnp.maximum(out + sc, 0.0)
    return jnp.transpose(out, (0, 2, 1))


# ---------------------------- parameter init ------------------------------- #
def make_params(key, C_in, C_out, eps=1e-5):
    """Eval-mode (folded-BN) parameters mirroring the PyTorch module.

    Conv weights are stored as (K, C_in, C_out); BatchNorm1d is folded to a
    per-channel scale/shift (y = conv(x) * s + b). The projection shortcut
    (1x1 conv + BN) exists iff C_in != C_out (stride fixed at 1).
    """
    projection = C_in != C_out
    ks = iter(jax.random.split(key, 16))

    def bn():
        gamma = 1.0 + 0.1 * jax.random.normal(next(ks), (C_out,), jnp.float32)
        beta = 0.1 * jax.random.normal(next(ks), (C_out,), jnp.float32)
        mean = 0.1 * jax.random.normal(next(ks), (C_out,), jnp.float32)
        var = 1.0 + 0.5 * jax.random.uniform(next(ks), (C_out,), jnp.float32)
        s = gamma / jnp.sqrt(var + eps)
        b = beta - mean * s
        return s.reshape(1, C_out), b.reshape(1, C_out)

    p = {}
    p["w1"] = 0.1 * jax.random.normal(next(ks), (3, C_in, C_out), jnp.float32)
    p["s1"], p["b1"] = bn()
    p["w2"] = 0.1 * jax.random.normal(next(ks), (3, C_out, C_out), jnp.float32)
    p["s2"], p["b2"] = bn()
    if projection:
        p["ws"] = 0.1 * jax.random.normal(next(ks), (C_in, C_out), jnp.float32)
        p["ss"], p["bs"] = bn()
    return p


# --------------------------------- test ------------------------------------ #
if __name__ == "__main__":
    key = jax.random.PRNGKey(0)
    k1, k2, k3, k4, k5 = jax.random.split(key, 5)

    # Case 1: projection shortcut (C_in != C_out), f32 compute, strict check.
    N, C_in, C_out, L = 2, 4, 8, 16
    x = jax.random.normal(k1, (N, C_in, L), jnp.float32)   # PyTorch NCL input
    params = make_params(k2, C_in, C_out)
    block = ResidualBlockPallas(params, compute_dtype=jnp.float32,
                                out_dtype=jnp.float32)
    out = jax.block_until_ready(block(x))
    ref = residual_block_ref(x, params)
    assert out.shape == (N, C_out, L)
    assert jnp.allclose(out, ref, atol=1e-4, rtol=1e-4)

    # Case 2: identity shortcut (C_in == C_out, stride == 1), f32.
    C = 8
    x2 = jax.random.normal(k3, (N, C, L), jnp.float32)
    params2 = make_params(k4, C, C)
    block2 = ResidualBlockPallas(params2, compute_dtype=jnp.float32,
                                 out_dtype=jnp.float32)
    out2 = jax.block_until_ready(block2(x2))
    ref2 = residual_block_ref(x2, params2)
    assert out2.shape == (N, C, L)
    assert jnp.allclose(out2, ref2, atol=1e-4, rtol=1e-4)

    # Case 3: L not a multiple of 8 and a batch needing padding (exercises the
    # multiple-of-(8/gcd(L,8)) batch-block picker instead of full-array tile).
    N3, L3 = 3, 12
    x3 = jax.random.normal(k5, (N3, C_in, L3), jnp.float32)
    out3 = jax.block_until_ready(block(x3))
    ref3 = residual_block_ref(x3, params)
    assert out3.shape == (N3, C_out, L3)
    assert jnp.allclose(out3, ref3, atol=1e-4, rtol=1e-4)

    # Case 4: generation-default compute dtype (bf16 on v6e/v7x), loose check.
    block4 = ResidualBlockPallas(params)
    out4 = jax.block_until_ready(block4(x)).astype(jnp.float32)
    assert out4.shape == (N, C_out, L)
    assert jnp.allclose(out4, ref, atol=1e-1, rtol=1e-1)

    print("KERNEL_OK")
</pallas_src>

<mosaic_0001>
module attributes {stable_mosaic.version = 11 : i64} {
  func.func @_resblock_kernel(%arg0: i32, %arg1: memref<32x128xf32, #tpu.memory_space<vmem>>, %arg2: memref<3x128x128xf32, #tpu.memory_space<vmem>>, %arg3: memref<3x128x128xf32, #tpu.memory_space<vmem>>, %arg4: memref<128x128xf32, #tpu.memory_space<vmem>>, %arg5: memref<1x128xf32, #tpu.memory_space<vmem>>, %arg6: memref<1x128xf32, #tpu.memory_space<vmem>>, %arg7: memref<1x128xf32, #tpu.memory_space<vmem>>, %arg8: memref<32x128xf32, #tpu.memory_space<vmem>>) attributes {dimension_semantics = [#tpu.dimension_semantics<parallel>], iteration_bounds = array<i64: 1>, scalar_prefetch = 0 : i64, scratch_operands = 0 : i64, tpu.core_type = #tpu.core_type<tc>, window_params = [{transform_indices = @transform_0, window_bounds = array<i64: 32, 128>}, {pipeline_mode = #tpu.pipeline_mode<synchronous>, transform_indices = @transform_1, window_bounds = array<i64: 3, 128, 128>}, {pipeline_mode = #tpu.pipeline_mode<synchronous>, transform_indices = @transform_2, window_bounds = array<i64: 3, 128, 128>}, {pipeline_mode = #tpu.pipeline_mode<synchronous>, transform_indices = @transform_3, window_bounds = array<i64: 128, 128>}, {pipeline_mode = #tpu.pipeline_mode<synchronous>, transform_indices = @transform_4, window_bounds = array<i64: 1, 128>}, {pipeline_mode = #tpu.pipeline_mode<synchronous>, transform_indices = @transform_5, window_bounds = array<i64: 1, 128>}, {pipeline_mode = #tpu.pipeline_mode<synchronous>, transform_indices = @transform_6, window_bounds = array<i64: 1, 128>}, {transform_indices = @transform_7, window_bounds = array<i64: 32, 128>}]} {
    %c0 = arith.constant 0 : index
    %c0_0 = arith.constant 0 : index
    %0 = vector.load %arg1[%c0, %c0_0] : memref<32x128xf32, #tpu.memory_space<vmem>>, vector<32x128xf32>
    %1 = tpu.iota {dimensions = array<i32: 0>} : vector<32x1xi32>
    %c16_i32 = arith.constant 16 : i32
    %c0_i32 = arith.constant 0 : i32
    %2 = arith.cmpi eq, %c16_i32, %c0_i32 : i32
    %c1_i32 = arith.constant 1 : i32
    %3 = arith.select %2, %c1_i32, %c16_i32 : i32
    %4 = vector.broadcast %3 : i32 to vector<32x1xi32>
    %5 = arith.remsi %1, %4 : vector<32x1xi32>
    %c0_i32_1 = arith.constant 0 : i32
    %6 = vector.broadcast %c0_i32_1 : i32 to vector<32x1xi32>
    %7 = arith.cmpi ne, %5, %6 : vector<32x1xi32>
    %c0_i32_2 = arith.constant 0 : i32
    %8 = vector.broadcast %c0_i32_2 : i32 to vector<32x1xi32>
    %9 = arith.cmpi slt, %5, %8 : vector<32x1xi32>
    %c0_i32_3 = arith.constant 0 : i32
    %10 = arith.cmpi slt, %3, %c0_i32_3 : i32
    %11 = vector.broadcast %10 : i1 to vector<32x1xi1>
    %12 = vector.broadcast %11 : vector<32x1xi1> to vector<32x1xi1>
    %13 = arith.xori %9, %12 : vector<32x1xi1>
    %14 = arith.andi %13, %7 : vector<32x1xi1>
    %15 = vector.broadcast %3 : i32 to vector<32x1xi32>
    %16 = arith.addi %5, %15 : vector<32x1xi32>
    %17 = arith.select %14, %16, %5 : vector<32x1xi1>, vector<32x1xi32>
    %c0_i32_4 = arith.constant 0 : i32
    %18 = vector.broadcast %c0_i32_4 : i32 to vector<32x1xi32>
    %19 = arith.cmpi ne, %17, %18 : vector<32x1xi32>
    %c15_i32 = arith.constant 15 : i32
    %20 = vector.broadcast %c15_i32 : i32 to vector<32x1xi32>
    %21 = arith.cmpi ne, %17, %20 : vector<32x1xi32>
    %c1_i32_5 = arith.constant 1 : i32
    %22 = tpu.dynamic_rotate %0 by %c1_i32_5 dim 0 : vector<32x128xf32>, i32 -> vector<32x128xf32>
    %cst = arith.constant 0.000000e+00 : f32
    %23 = vector.shape_cast %19 : vector<32x1xi1> to vector<32x1xi1>
    %24 = vector.broadcast %23 : vector<32x1xi1> to vector<32x128xi1>
    %25 = vector.broadcast %cst : f32 to vector<32x128xf32>
    %26 = arith.select %24, %22, %25 : vector<32x128xi1>, vector<32x128xf32>
    %c0_6 = arith.constant 0 : index
    %c0_7 = arith.constant 0 : index
    %c0_8 = arith.constant 0 : index
    %27 = vector.load %arg2[%c0_6, %c0_7, %c0_8] : memref<3x128x128xf32, #tpu.memory_space<vmem>>, vector<1x128x128xf32>
    %28 = vector.shape_cast %27 : vector<1x128x128xf32> to vector<128x128xf32>
    %cst_9 = arith.constant dense<0.000000e+00> : vector<32x128xf32>
    %29 = tpu.matmul %26, %28, %cst_9 {dimension_numbers = #tpu.dot_dimension_numbers<[1], [0], [0], [1], [0, 0, 1, 1], [], []>} : vector<32x128xf32>, vector<128x128xf32>, vector<32x128xf32> -> vector<32x128xf32>
    %c1 = arith.constant 1 : index
    %c0_10 = arith.constant 0 : index
    %c0_11 = arith.constant 0 : index
    %30 = vector.load %arg2[%c1, %c0_10, %c0_11] : memref<3x128x128xf32, #tpu.memory_space<vmem>>, vector<1x128x128xf32>
    %31 = vector.shape_cast %30 : vector<1x128x128xf32> to vector<128x128xf32>
    %cst_12 = arith.constant dense<0.000000e+00> : vector<32x128xf32>
    %32 = tpu.matmul %0, %31, %cst_12 {dimension_numbers = #tpu.dot_dimension_numbers<[1], [0], [0], [1], [0, 0, 1, 1], [], []>} : vector<32x128xf32>, vector<128x128xf32>, vector<32x128xf32> -> vector<32x128xf32>
    %33 = arith.addf %29, %32 : vector<32x128xf32>
    %c31_i32 = arith.constant 31 : i32
    %34 = tpu.dynamic_rotate %0 by %c31_i32 dim 0 : vector<32x128xf32>, i32 -> vector<32x128xf32>
    %cst_13 = arith.constant 0.000000e+00 : f32
    %35 = vector.shape_cast %21 : vector<32x1xi1> to vector<32x1xi1>
    %36 = vector.broadcast %35 : vector<32x1xi1> to vector<32x128xi1>
    %37 = vector.broadcast %cst_13 : f32 to vector<32x128xf32>
    %38 = arith.select %36, %34, %37 : vector<32x128xi1>, vector<32x128xf32>
    %c2 = arith.constant 2 : index
    %c0_14 = arith.constant 0 : index
    %c0_15 = arith.constant 0 : index
    %39 = vector.load %arg2[%c2, %c0_14, %c0_15] : memref<3x128x128xf32, #tpu.memory_space<vmem>>, vector<1x128x128xf32>
    %40 = vector.shape_cast %39 : vector<1x128x128xf32> to vector<128x128xf32>
    %cst_16 = arith.constant dense<0.000000e+00> : vector<32x128xf32>
    %41 = tpu.matmul %38, %40, %cst_16 {dimension_numbers = #tpu.dot_dimension_numbers<[1], [0], [0], [1], [0, 0, 1, 1], [], []>} : vector<32x128xf32>, vector<128x128xf32>, vector<32x128xf32> -> vector<32x128xf32>
    %42 = arith.addf %33, %41 : vector<32x128xf32>
    %c0_17 = arith.constant 0 : index
    %c0_18 = arith.constant 0 : index
    %43 = vector.load %arg5[%c0_17, %c0_18] : memref<1x128xf32, #tpu.memory_space<vmem>>, vector<1x128xf32>
    %44 = vector.broadcast %43 : vector<1x128xf32> to vector<32x128xf32>
    %45 = arith.addf %42, %44 : vector<32x128xf32>
    %cst_19 = arith.constant 0.000000e+00 : f32
    %46 = vector.broadcast %cst_19 : f32 to vector<32x128xf32>
    %47 = arith.maximumf %45, %46 : vector<32x128xf32>
    %c1_i32_20 = arith.constant 1 : i32
    %48 = tpu.dynamic_rotate %47 by %c1_i32_20 dim 0 : vector<32x128xf32>, i32 -> vector<32x128xf32>
    %cst_21 = arith.constant 0.000000e+00 : f32
    %49 = vector.shape_cast %19 : vector<32x1xi1> to vector<32x1xi1>
    %50 = vector.broadcast %49 : vector<32x1xi1> to vector<32x128xi1>
    %51 = vector.broadcast %cst_21 : f32 to vector<32x128xf32>
    %52 = arith.select %50, %48, %51 : vector<32x128xi1>, vector<32x128xf32>
    %c0_22 = arith.constant 0 : index
    %c0_23 = arith.constant 0 : index
    %c0_24 = arith.constant 0 : index
    %53 = vector.load %arg3[%c0_22, %c0_23, %c0_24] : memref<3x128x128xf32, #tpu.memory_space<vmem>>, vector<1x128x128xf32>
    %54 = vector.shape_cast %53 : vector<1x128x128xf32> to vector<128x128xf32>
    %cst_25 = arith.constant dense<0.000000e+00> : vector<32x128xf32>
    %55 = tpu.matmul %52, %54, %cst_25 {dimension_numbers = #tpu.dot_dimension_numbers<[1], [0], [0], [1], [0, 0, 1, 1], [], []>} : vector<32x128xf32>, vector<128x128xf32>, vector<32x128xf32> -> vector<32x128xf32>
    %c1_26 = arith.constant 1 : index
    %c0_27 = arith.constant 0 : index
    %c0_28 = arith.constant 0 : index
    %56 = vector.load %arg3[%c1_26, %c0_27, %c0_28] : memref<3x128x128xf32, #tpu.memory_space<vmem>>, vector<1x128x128xf32>
    %57 = vector.shape_cast %56 : vector<1x128x128xf32> to vector<128x128xf32>
    %cst_29 = arith.constant dense<0.000000e+00> : vector<32x128xf32>
    %58 = tpu.matmul %47, %57, %cst_29 {dimension_numbers = #tpu.dot_dimension_numbers<[1], [0], [0], [1], [0, 0, 1, 1], [], []>} : vector<32x128xf32>, vector<128x128xf32>, vector<32x128xf32> -> vector<32x128xf32>
    %59 = arith.addf %55, %58 : vector<32x128xf32>
    %c31_i32_30 = arith.constant 31 : i32
    %60 = tpu.dynamic_rotate %47 by %c31_i32_30 dim 0 : vector<32x128xf32>, i32 -> vector<32x128xf32>
    %cst_31 = arith.constant 0.000000e+00 : f32
    %61 = vector.shape_cast %21 : vector<32x1xi1> to vector<32x1xi1>
    %62 = vector.broadcast %61 : vector<32x1xi1> to vector<32x128xi1>
    %63 = vector.broadcast %cst_31 : f32 to vector<32x128xf32>
    %64 = arith.select %62, %60, %63 : vector<32x128xi1>, vector<32x128xf32>
    %c2_32 = arith.constant 2 : index
    %c0_33 = arith.constant 0 : index
    %c0_34 = arith.constant 0 : index
    %65 = vector.load %arg3[%c2_32, %c0_33, %c0_34] : memref<3x128x128xf32, #tpu.memory_space<vmem>>, vector<1x128x128xf32>
    %66 = vector.shape_cast %65 : vector<1x128x128xf32> to vector<128x128xf32>
    %cst_35 = arith.constant dense<0.000000e+00> : vector<32x128xf32>
    %67 = tpu.matmul %64, %66, %cst_35 {dimension_numbers = #tpu.dot_dimension_numbers<[1], [0], [0], [1], [0, 0, 1, 1], [], []>} : vector<32x128xf32>, vector<128x128xf32>, vector<32x128xf32> -> vector<32x128xf32>
    %68 = arith.addf %59, %67 : vector<32x128xf32>
    %c0_36 = arith.constant 0 : index
    %c0_37 = arith.constant 0 : index
    %69 = vector.load %arg6[%c0_36, %c0_37] : memref<1x128xf32, #tpu.memory_space<vmem>>, vector<1x128xf32>
    %70 = vector.broadcast %69 : vector<1x128xf32> to vector<32x128xf32>
    %71 = arith.addf %68, %70 : vector<32x128xf32>
    %c0_38 = arith.constant 0 : index
    %c0_39 = arith.constant 0 : index
    %72 = vector.load %arg4[%c0_38, %c0_39] : memref<128x128xf32, #tpu.memory_space<vmem>>, vector<128x128xf32>
    %cst_40 = arith.constant dense<0.000000e+00> : vector<32x128xf32>
    %73 = tpu.matmul %0, %72, %cst_40 {dimension_numbers = #tpu.dot_dimension_numbers<[1], [0], [0], [1], [0, 0, 1, 1], [], []>} : vector<32x128xf32>, vector<128x128xf32>, vector<32x128xf32> -> vector<32x128xf32>
    %74 = arith.addf %71, %73 : vector<32x128xf32>
    %c0_41 = arith.constant 0 : index
    %c0_42 = arith.constant 0 : index
    %75 = vector.load %arg7[%c0_41, %c0_42] : memref<1x128xf32, #tpu.memory_space<vmem>>, vector<1x128xf32>
    %76 = vector.broadcast %75 : vector<1x128xf32> to vector<32x128xf32>
    %77 = arith.addf %74, %76 : vector<32x128xf32>
    %cst_43 = arith.constant 0.000000e+00 : f32
    %78 = vector.broadcast %cst_43 : f32 to vector<32x128xf32>
    %79 = arith.maximumf %77, %78 : vector<32x128xf32>
    %c0_44 = arith.constant 0 : index
    %c0_45 = arith.constant 0 : index
    %80 = vector.load %arg8[%c0_44, %c0_45] : memref<32x128xf32, #tpu.memory_space<vmem>>, vector<32x128xf32>
    tpu.vector_store %arg8[%c0_44, %c0_45], %79 {strides = array<i32>} : memref<32x128xf32, #tpu.memory_space<vmem>>, vector<32x128xf32>,
    return
  }
  func.func @transform_0(%arg0: i32) -> (i32, i32) {
    %c0_i32 = arith.constant 0 : i32
    %c0_i32_0 = arith.constant 0 : i32
    return %arg0, %c0_i32 : i32, i32
  }
  func.func @transform_1(%arg0: i32) -> (i32, i32, i32) {
    %c0_i32 = arith.constant 0 : i32
    %c0_i32_0 = arith.constant 0 : i32
    %c0_i32_1 = arith.constant 0 : i32
    %c0_i32_2 = arith.constant 0 : i32
    return %c0_i32, %c0_i32_0, %c0_i32_1 : i32, i32, i32
  }
  func.func @transform_2(%arg0: i32) -> (i32, i32, i32) {
    %c0_i32 = arith.constant 0 : i32
    %c0_i32_0 = arith.constant 0 : i32
    %c0_i32_1 = arith.constant 0 : i32
    %c0_i32_2 = arith.constant 0 : i32
    return %c0_i32, %c0_i32_0, %c0_i32_1 : i32, i32, i32
  }
  func.func @transform_3(%arg0: i32) -> (i32, i32) {
    %c0_i32 = arith.constant 0 : i32
    %c0_i32_0 = arith.constant 0 : i32
    %c0_i32_1 = arith.constant 0 : i32
    return %c0_i32, %c0_i32_0 : i32, i32
  }
  func.func @transform_4(%arg0: i32) -> (i32, i32) {
    %c0_i32 = arith.constant 0 : i32
    %c0_i32_0 = arith.constant 0 : i32
    %c0_i32_1 = arith.constant 0 : i32
    return %c0_i32, %c0_i32_0 : i32, i32
  }
  func.func @transform_5(%arg0: i32) -> (i32, i32) {
    %c0_i32 = arith.constant 0 : i32
    %c0_i32_0 = arith.constant 0 : i32
    %c0_i32_1 = arith.constant 0 : i32
    return %c0_i32, %c0_i32_0 : i32, i32
  }
  func.func @transform_6(%arg0: i32) -> (i32, i32) {
    %c0_i32 = arith.constant 0 : i32
    %c0_i32_0 = arith.constant 0 : i32
    %c0_i32_1 = arith.constant 0 : i32
    return %c0_i32, %c0_i32_0 : i32, i32
  }
  func.func @transform_7(%arg0: i32) -> (i32, i32) {
    %c0_i32 = arith.constant 0 : i32
    %c0_i32_0 = arith.constant 0 : i32
    return %arg0, %c0_i32 : i32, i32
  }
}

module attributes {stable_mosaic.version = 11 : i64} {
  func.func @_resblock_kernel(%arg0: i32, %arg1: memref<32x128xf32, #tpu.memory_space<vmem>>, %arg2: memref<3x128x128xf32, #tpu.memory_space<vmem>>, %arg3: memref<3x128x128xf32, #tpu.memory_space<vmem>>, %arg4: memref<128x128xf32, #tpu.memory_space<vmem>>, %arg5: memref<1x128xf32, #tpu.memory_space<vmem>>, %arg6: memref<1x128xf32, #tpu.memory_space<vmem>>, %arg7: memref<1x128xf32, #tpu.memory_space<vmem>>, %arg8: memref<32x128xf32, #tpu.memory_space<vmem>>) attributes {dimension_semantics = [#tpu.dimension_semantics<parallel>], iteration_bounds = array<i64: 1>, scalar_prefetch = 0 : i64, scratch_operands = 0 : i64, tpu.core_type = #tpu.core_type<tc>, window_params = [{transform_indices = @transform_0, window_bounds = array<i64: 32, 128>}, {pipeline_mode = #tpu.pipeline_mode<synchronous>, transform_indices = @transform_1, window_bounds = array<i64: 3, 128, 128>}, {pipeline_mode = #tpu.pipeline_mode<synchronous>, transform_indices = @transform_2, window_bounds = array<i64: 3, 128, 128>}, {pipeline_mode = #tpu.pipeline_mode<synchronous>, transform_indices = @transform_3, window_bounds = array<i64: 128, 128>}, {pipeline_mode = #tpu.pipeline_mode<synchronous>, transform_indices = @transform_4, window_bounds = array<i64: 1, 128>}, {pipeline_mode = #tpu.pipeline_mode<synchronous>, transform_indices = @transform_5, window_bounds = array<i64: 1, 128>}, {pipeline_mode = #tpu.pipeline_mode<synchronous>, transform_indices = @transform_6, window_bounds = array<i64: 1, 128>}, {transform_indices = @transform_7, window_bounds = array<i64: 32, 128>}]} {
    %c0 = arith.constant 0 : index
    %c0_0 = arith.constant 0 : index
    %0 = vector.load %arg1[%c0, %c0_0] : memref<32x128xf32, #tpu.memory_space<vmem>>, vector<32x128xf32>
    %1 = tpu.iota {dimensions = array<i32: 0>} : vector<32x1xi32>
    %c16_i32 = arith.constant 16 : i32
    %c0_i32 = arith.constant 0 : i32
    %2 = arith.cmpi eq, %c16_i32, %c0_i32 : i32
    %c1_i32 = arith.constant 1 : i32
    %3 = arith.select %2, %c1_i32, %c16_i32 : i32
    %4 = vector.broadcast %3 : i32 to vector<32x1xi32>
    %5 = arith.remsi %1, %4 : vector<32x1xi32>
    %c0_i32_1 = arith.constant 0 : i32
    %6 = vector.broadcast %c0_i32_1 : i32 to vector<32x1xi32>
    %7 = arith.cmpi ne, %5, %6 : vector<32x1xi32>
    %c0_i32_2 = arith.constant 0 : i32
    %8 = vector.broadcast %c0_i32_2 : i32 to vector<32x1xi32>
    %9 = arith.cmpi slt, %5, %8 : vector<32x1xi32>
    %c0_i32_3 = arith.constant 0 : i32
    %10 = arith.cmpi slt, %3, %c0_i32_3 : i32
    %11 = vector.broadcast %10 : i1 to vector<32x1xi1>
    %12 = vector.broadcast %11 : vector<32x1xi1> to vector<32x1xi1>
    %13 = arith.xori %9, %12 : vector<32x1xi1>
    %14 = arith.andi %13, %7 : vector<32x1xi1>
    %15 = vector.broadcast %3 : i32 to vector<32x1xi32>
    %16 = arith.addi %5, %15 : vector<32x1xi32>
    %17 = arith.select %14, %16, %5 : vector<32x1xi1>, vector<32x1xi32>
    %c0_i32_4 = arith.constant 0 : i32
    %18 = vector.broadcast %c0_i32_4 : i32 to vector<32x1xi32>
    %19 = arith.cmpi ne, %17, %18 : vector<32x1xi32>
    %c15_i32 = arith.constant 15 : i32
    %20 = vector.broadcast %c15_i32 : i32 to vector<32x1xi32>
    %21 = arith.cmpi ne, %17, %20 : vector<32x1xi32>
    %c1_i32_5 = arith.constant 1 : i32
    %22 = tpu.dynamic_rotate %0 by %c1_i32_5 dim 0 : vector<32x128xf32>, i32 -> vector<32x128xf32>
    %cst = arith.constant 0.000000e+00 : f32
    %23 = vector.shape_cast %19 : vector<32x1xi1> to vector<32x1xi1>
    %24 = vector.broadcast %23 : vector<32x1xi1> to vector<32x128xi1>
    %25 = vector.broadcast %cst : f32 to vector<32x128xf32>
    %26 = arith.select %24, %22, %25 : vector<32x128xi1>, vector<32x128xf32>
    %c0_6 = arith.constant 0 : index
    %c0_7 = arith.constant 0 : index
    %c0_8 = arith.constant 0 : index
    %27 = vector.load %arg2[%c0_6, %c0_7, %c0_8] : memref<3x128x128xf32, #tpu.memory_space<vmem>>, vector<1x128x128xf32>
    %28 = vector.shape_cast %27 : vector<1x128x128xf32> to vector<128x128xf32>
    %cst_9 = arith.constant dense<0.000000e+00> : vector<32x128xf32>
    %29 = tpu.matmul %26, %28, %cst_9 {dimension_numbers = #tpu.dot_dimension_numbers<[1], [0], [0], [1], [0, 0, 1, 1], [], []>} : vector<32x128xf32>, vector<128x128xf32>, vector<32x128xf32> -> vector<32x128xf32>
    %c1 = arith.constant 1 : index
    %c0_10 = arith.constant 0 : index
    %c0_11 = arith.constant 0 : index
    %30 = vector.load %arg2[%c1, %c0_10, %c0_11] : memref<3x128x128xf32, #tpu.memory_space<vmem>>, vector<1x128x128xf32>
    %31 = vector.shape_cast %30 : vector<1x128x128xf32> to vector<128x128xf32>
    %cst_12 = arith.constant dense<0.000000e+00> : vector<32x128xf32>
    %32 = tpu.matmul %0, %31, %cst_12 {dimension_numbers = #tpu.dot_dimension_numbers<[1], [0], [0], [1], [0, 0, 1, 1], [], []>} : vector<32x128xf32>, vector<128x128xf32>, vector<32x128xf32> -> vector<32x128xf32>
    %33 = arith.addf %29, %32 : vector<32x128xf32>
    %c31_i32 = arith.constant 31 : i32
    %34 = tpu.dynamic_rotate %0 by %c31_i32 dim 0 : vector<32x128xf32>, i32 -> vector<32x128xf32>
    %cst_13 = arith.constant 0.000000e+00 : f32
    %35 = vector.shape_cast %21 : vector<32x1xi1> to vector<32x1xi1>
    %36 = vector.broadcast %35 : vector<32x1xi1> to vector<32x128xi1>
    %37 = vector.broadcast %cst_13 : f32 to vector<32x128xf32>
    %38 = arith.select %36, %34, %37 : vector<32x128xi1>, vector<32x128xf32>
    %c2 = arith.constant 2 : index
    %c0_14 = arith.constant 0 : index
    %c0_15 = arith.constant 0 : index
    %39 = vector.load %arg2[%c2, %c0_14, %c0_15] : memref<3x128x128xf32, #tpu.memory_space<vmem>>, vector<1x128x128xf32>
    %40 = vector.shape_cast %39 : vector<1x128x128xf32> to vector<128x128xf32>
    %cst_16 = arith.constant dense<0.000000e+00> : vector<32x128xf32>
    %41 = tpu.matmul %38, %40, %cst_16 {dimension_numbers = #tpu.dot_dimension_numbers<[1], [0], [0], [1], [0, 0, 1, 1], [], []>} : vector<32x128xf32>, vector<128x128xf32>, vector<32x128xf32> -> vector<32x128xf32>
    %42 = arith.addf %33, %41 : vector<32x128xf32>
    %c0_17 = arith.constant 0 : index
    %c0_18 = arith.constant 0 : index
    %43 = vector.load %arg5[%c0_17, %c0_18] : memref<1x128xf32, #tpu.memory_space<vmem>>, vector<1x128xf32>
    %44 = vector.broadcast %43 : vector<1x128xf32> to vector<32x128xf32>
    %45 = arith.addf %42, %44 : vector<32x128xf32>
    %cst_19 = arith.constant 0.000000e+00 : f32
    %46 = vector.broadcast %cst_19 : f32 to vector<32x128xf32>
    %47 = arith.maximumf %45, %46 : vector<32x128xf32>
    %c1_i32_20 = arith.constant 1 : i32
    %48 = tpu.dynamic_rotate %47 by %c1_i32_20 dim 0 : vector<32x128xf32>, i32 -> vector<32x128xf32>
    %cst_21 = arith.constant 0.000000e+00 : f32
    %49 = vector.shape_cast %19 : vector<32x1xi1> to vector<32x1xi1>
    %50 = vector.broadcast %49 : vector<32x1xi1> to vector<32x128xi1>
    %51 = vector.broadcast %cst_21 : f32 to vector<32x128xf32>
    %52 = arith.select %50, %48, %51 : vector<32x128xi1>, vector<32x128xf32>
    %c0_22 = arith.constant 0 : index
    %c0_23 = arith.constant 0 : index
    %c0_24 = arith.constant 0 : index
    %53 = vector.load %arg3[%c0_22, %c0_23, %c0_24] : memref<3x128x128xf32, #tpu.memory_space<vmem>>, vector<1x128x128xf32>
    %54 = vector.shape_cast %53 : vector<1x128x128xf32> to vector<128x128xf32>
    %cst_25 = arith.constant dense<0.000000e+00> : vector<32x128xf32>
    %55 = tpu.matmul %52, %54, %cst_25 {dimension_numbers = #tpu.dot_dimension_numbers<[1], [0], [0], [1], [0, 0, 1, 1], [], []>} : vector<32x128xf32>, vector<128x128xf32>, vector<32x128xf32> -> vector<32x128xf32>
    %c1_26 = arith.constant 1 : index
    %c0_27 = arith.constant 0 : index
    %c0_28 = arith.constant 0 : index
    %56 = vector.load %arg3[%c1_26, %c0_27, %c0_28] : memref<3x128x128xf32, #tpu.memory_space<vmem>>, vector<1x128x128xf32>
    %57 = vector.shape_cast %56 : vector<1x128x128xf32> to vector<128x128xf32>
    %cst_29 = arith.constant dense<0.000000e+00> : vector<32x128xf32>
    %58 = tpu.matmul %47, %57, %cst_29 {dimension_numbers = #tpu.dot_dimension_numbers<[1], [0], [0], [1], [0, 0, 1, 1], [], []>} : vector<32x128xf32>, vector<128x128xf32>, vector<32x128xf32> -> vector<32x128xf32>
    %59 = arith.addf %55, %58 : vector<32x128xf32>
    %c31_i32_30 = arith.constant 31 : i32
    %60 = tpu.dynamic_rotate %47 by %c31_i32_30 dim 0 : vector<32x128xf32>, i32 -> vector<32x128xf32>
    %cst_31 = arith.constant 0.000000e+00 : f32
    %61 = vector.shape_cast %21 : vector<32x1xi1> to vector<32x1xi1>
    %62 = vector.broadcast %61 : vector<32x1xi1> to vector<32x128xi1>
    %63 = vector.broadcast %cst_31 : f32 to vector<32x128xf32>
    %64 = arith.select %62, %60, %63 : vector<32x128xi1>, vector<32x128xf32>
    %c2_32 = arith.constant 2 : index
    %c0_33 = arith.constant 0 : index
    %c0_34 = arith.constant 0 : index
    %65 = vector.load %arg3[%c2_32, %c0_33, %c0_34] : memref<3x128x128xf32, #tpu.memory_space<vmem>>, vector<1x128x128xf32>
    %66 = vector.shape_cast %65 : vector<1x128x128xf32> to vector<128x128xf32>
    %cst_35 = arith.constant dense<0.000000e+00> : vector<32x128xf32>
    %67 = tpu.matmul %64, %66, %cst_35 {dimension_numbers = #tpu.dot_dimension_numbers<[1], [0], [0], [1], [0, 0, 1, 1], [], []>} : vector<32x128xf32>, vector<128x128xf32>, vector<32x128xf32> -> vector<32x128xf32>
    %68 = arith.addf %59, %67 : vector<32x128xf32>
    %c0_36 = arith.constant 0 : index
    %c0_37 = arith.constant 0 : index
    %69 = vector.load %arg6[%c0_36, %c0_37] : memref<1x128xf32, #tpu.memory_space<vmem>>, vector<1x128xf32>
    %70 = vector.broadcast %69 : vector<1x128xf32> to vector<32x128xf32>
    %71 = arith.addf %68, %70 : vector<32x128xf32>
    %c0_38 = arith.constant 0 : index
    %c0_39 = arith.constant 0 : index
    %72 = vector.load %arg4[%c0_38, %c0_39] : memref<128x128xf32, #tpu.memory_space<vmem>>, vector<128x128xf32>
    %cst_40 = arith.constant dense<0.000000e+00> : vector<32x128xf32>
    %73 = tpu.matmul %0, %72, %cst_40 {dimension_numbers = #tpu.dot_dimension_numbers<[1], [0], [0], [1], [0, 0, 1, 1], [], []>} : vector<32x128xf32>, vector<128x128xf32>, vector<32x128xf32> -> vector<32x128xf32>
    %74 = arith.addf %71, %73 : vector<32x128xf32>
    %c0_41 = arith.constant 0 : index
    %c0_42 = arith.constant 0 : index
    %75 = vector.load %arg7[%c0_41, %c0_42] : memref<1x128xf32, #tpu.memory_space<vmem>>, vector<1x128xf32>
    %76 = vector.broadcast %75 : vector<1x128xf32> to vector<32x128xf32>
    %77 = arith.addf %74, %76 : vector<32x128xf32>
    %cst_43 = arith.constant 0.000000e+00 : f32
    %78 = vector.broadcast %cst_43 : f32 to vector<32x128xf32>
    %79 = arith.maximumf %77, %78 : vector<32x128xf32>
    %c0_44 = arith.constant 0 : index
    %c0_45 = arith.constant 0 : index
    %80 = vector.load %arg8[%c0_44, %c0_45] : memref<32x128xf32, #tpu.memory_space<vmem>>, vector<32x128xf32>
    tpu.vector_store %arg8[%c0_44, %c0_45], %79 {strides = array<i32>} : memref<32x128xf32, #tpu.memory_space<vmem>>, vector<32x128xf32>,
    return
  }
  func.func @transform_0(%arg0: i32) -> (i32, i32) {
    %c0_i32 = arith.constant 0 : i32
    %c0_i32_0 = arith.constant 0 : i32
    return %arg0, %c0_i32 : i32, i32
  }
  func.func @transform_1(%arg0: i32) -> (i32, i32, i32) {
    %c0_i32 = arith.constant 0 : i32
    %c0_i32_0 = arith.constant 0 : i32
    %c0_i32_1 = arith.constant 0 : i32
    %c0_i32_2 = arith.constant 0 : i32
    return %c0_i32, %c0_i32_0, %c0_i32_1 : i32, i32, i32
  }
  func.func @transform_2(%arg0: i32) -> (i32, i32, i32) {
    %c0_i32 = arith.constant 0 : i32
    %c0_i32_0 = arith.constant 0 : i32
    %c0_i32_1 = arith.constant 0 : i32
    %c0_i32_2 = arith.constant 0 : i32
    return %c0_i32, %c0_i32_0, %c0_i32_1 : i32, i32, i32
  }
  func.func @transform_3(%arg0: i32) -> (i32, i32) {
    %c0_i32 = arith.constant 0 : i32
    %c0_i32_0 = arith.constant 0 : i32
    %c0_i32_1 = arith.constant 0 : i32
    return %c0_i32, %c0_i32_0 : i32, i32
  }
  func.func @transform_4(%arg0: i32) -> (i32, i32) {
    %c0_i32 = arith.constant 0 : i32
    %c0_i32_0 = arith.constant 0 : i32
    %c0_i32_1 = arith.constant 0 : i32
    return %c0_i32, %c0_i32_0 : i32, i32
  }
  func.func @transform_5(%arg0: i32) -> (i32, i32) {
    %c0_i32 = arith.constant 0 : i32
    %c0_i32_0 = arith.constant 0 : i32
    %c0_i32_1 = arith.constant 0 : i32
    return %c0_i32, %c0_i32_0 : i32, i32
  }
  func.func @transform_6(%arg0: i32) -> (i32, i32) {
    %c0_i32 = arith.constant 0 : i32
    %c0_i32_0 = arith.constant 0 : i32
    %c0_i32_1 = arith.constant 0 : i32
    return %c0_i32, %c0_i32_0 : i32, i32
  }
  func.func @transform_7(%arg0: i32) -> (i32, i32) {
    %c0_i32 = arith.constant 0 : i32
    %c0_i32_0 = arith.constant 0 : i32
    return %arg0, %c0_i32 : i32, i32
  }
}

</mosaic_0001>

<bundles_post_ra>
// kernel: _apply_nlc.1
= control target key start
LH: loop header
LB: loop body
LE: loop exit
PB: predicated region body
PF: predicated region fallthrough
CT: control target
= control target key end

     0   :  { %12 = vsyncpa [#allocation3], 0  ;;  %s1775_s0 = inlined_call_operand.vmem [shape: f32[32,128], index: 0, kind: input, shape index: {}]   ;;  %s1776_s1 = inlined_call_operand.hbm [shape: f32[3,128,128], index: 1, kind: input, shape index: {}]   ;;  %s1777_s2 = inlined_call_operand.hbm [shape: f32[3,128,128], index: 2, kind: input, shape index: {}]   ;;  %s1778_s3 = inlined_call_operand.hbm [shape: f32[128,128], index: 3, kind: input, shape index: {}]   ;;  %s1779_s4 = inlined_call_operand.vmem [shape: f32[1,128], index: 4, kind: input, shape index: {}]   ;;  %s1780_s5 = inlined_call_operand.vmem [shape: f32[1,128], index: 5, kind: input, shape index: {}]   ;;  %s1781_s6 = inlined_call_operand.vmem [shape: f32[1,128], index: 6, kind: input, shape index: {}]   ;;  %s1782_s7 = inlined_call_operand.vmem [shape: f32[32,128], index: 7, kind: output, shape index: {}]  }
   0x1   :  { %13 = vsyncpa [#allocation5], 0  ;;  %s1490_s24 = smov [#allocation4]   ;;  %s1491_s26 = smov [#allocation2]  }
   0x2   :  { %s33_s25 = sshll.u32 %s1490_s24, 4  ;;  %s21_s27 = sshll.u32 %s1491_s26, 4  ;;  %s34_s25 = int_to_ptr.vmem [resolvable:$true] %s33_s25  ;;  %s22_s27 = int_to_ptr.vmem [resolvable:$true] %s21_s27 }
   0x3   :  { %s1434_s28 = scalar_lea.vmem %s34_s25, 6144  ;;  %p1439_p1 = scmp.lt.s32.totalorder %s34_s25, %s34_s25 }
   0x4   :  { %p1435_p0 = scmp.ne.s32.totalorder %s34_s25, %s1434_s28  ;;  %p1440_p2 = scmp.lt.s32.totalorder %s1434_s28, %s1434_s28 }
   0x6   :  { %p1441_p3 = por %p1440_p2, %p1439_p1 }
   0x8   :  { %p1442_p4 = pnand %p1441_p3, %p1435_p0 }
   0xa   :  { %1445 = shalt.err (!%p1442_p4)
}
   0xb   :  { %s1492_s29 = smov 128   ;;  %s1493_s30 = smov 8  }
   0xc   :  { %39 = dma.hbm_to_vmem [thread:$0]  %s1777_s2, 6144, %s34_s25, [#allocation5], %s1492_s29, %s1492_s29, %s1493_s30  }
   0xd   :  { %s1454_s10 = scalar_lea.vmem %s22_s27, 6144  ;;  %p1459_p6 = scmp.lt.s32.totalorder %s22_s27, %s22_s27 }
   0xe   :  { %p1455_p5 = scmp.ne.s32.totalorder %s22_s27, %s1454_s10  ;;  %p1460_p7 = scmp.lt.s32.totalorder %s1454_s10, %s1454_s10 }
  0x10   :  { %p1461_p8 = por %p1460_p7, %p1459_p6 }
  0x12   :  { %p1462_p9 = pnand %p1461_p8, %p1455_p5 }
  0x14   :  { %1465 = shalt.err (!%p1462_p9)
}
  0x15   :  { %27 = dma.hbm_to_vmem [thread:$0]  %s1776_s1, 6144, %s22_s27, [#allocation3], %s1492_s29, %s1492_s29, %s1493_s30  }
  0x16   :  { %s1494_s13 = smov [#allocation6]  }
  0x17   :  { %s45_s14 = sshll.u32 %s1494_s13, 4  ;;  %s46_s14 = int_to_ptr.vmem [resolvable:$true] %s45_s14 }
  0x18   :  { %s1474_s15 = scalar_lea.vmem %s46_s14, 2048  ;;  %p1479_p11 = scmp.lt.s32.totalorder %s46_s14, %s46_s14 }
  0x19   :  { %p1475_p10 = scmp.ne.s32.totalorder %s46_s14, %s1474_s15  ;;  %p1480_p12 = scmp.lt.s32.totalorder %s1474_s15, %s1474_s15 }
  0x1b   :  { %p1481_p13 = por %p1480_p12, %p1479_p11 }
  0x1d   :  { %p1482_p0 = pnand %p1481_p13, %p1475_p10 }
  0x1f   :  { %1485 = shalt.err (!%p1482_p0)
}
  0x20   :  { %51 = dma.hbm_to_vmem [thread:$0]  %s1778_s3, 2048, %s46_s14, [#allocation5], %s1492_s29, %s1492_s29, %s1493_s30  }
  0x21   :  { %1486 = dma.done.wait [#allocation3], 6144  }
  0x22   :  { %1487 = vsyncadd [#allocation3], 4294961152 }
  0x23   :  { %1488 = dma.done.wait [#allocation5], 8192  }
  0x24   :  { %1489 = vsyncadd [#allocation5], 4294959104  ;;  %v185_v0 = vld [vmem:[#allocation2 + $0xf8] sm:$0xff]  ;;  %v184_v2 = vld [vmem:[#allocation2 + $0xf0] sm:$0xff]  ;;  %v71_v22 = vlaneseq }
  0x25   :  { %v168_v1 = vld [vmem:[#allocation2 + $0x78] sm:$0xff]  ;;  %1123 = vmatprep.subr.mxu0 %v185_v0  ;;  %v167_v3 = vld [vmem:[#allocation2 + $0x70] sm:$0xff]  ;;  %v183_v4 = vld [vmem:[#allocation2 + $0xe8] sm:$0xff] }
  0x26   :  { %1161 = vmatprep.subr.mxu1 %v168_v1  ;;  %1124 = vmatpush3.msra.mxu0 %v185_v0  ;;  %v166_v5 = vld [vmem:[#allocation2 + $0x68] sm:$0xff]  ;;  %v182_v6 = vld [vmem:[#allocation2 + $0xe0] sm:$0xff]  ;;  %v181_v8 = vld [vmem:[#allocation2 + $0xd8] sm:$0xff]  ;;  %v1544_v27 = vshrl.u32 %v71_v22, 7 }
  0x27   :  { %1162 = vmatpush3.msra.mxu1 %v168_v1  ;;  %1125 = vmatprep.subr.mxu0 %v184_v2  ;;  %v165_v7 = vld [vmem:[#allocation2 + $0x60] sm:$0xff]  ;;  %v164_v9 = vld [vmem:[#allocation2 + $0x58] sm:$0xff]  ;;  %v180_v10 = vld [vmem:[#allocation2 + $0xd0] sm:$0xff] }
  0x28   :  { %1163 = vmatprep.subr.mxu1 %v167_v3  ;;  %1126 = vmatpush3.msra.mxu0 %v184_v2  ;;  %v163_v11 = vld [vmem:[#allocation2 + $0x50] sm:$0xff]  ;;  %v179_v12 = vld [vmem:[#allocation2 + $0xc8] sm:$0xff]  ;;  %v178_v14 = vld [vmem:[#allocation2 + $0xc0] sm:$0xff]  ;;  %v74_v33 = vadd.s32 16, %v1544_v27  ;;  %v80_v36 = vand.u32 15, %v1544_v27  ;;  %vm136_vm0 = vcmp.lt.s32.totalorder %v1544_v27, 1 }
  0x29   :  { %1164 = vmatpush3.msra.mxu1 %v167_v3  ;;  %1127 = vmatprep.subr.mxu0 %v183_v4  ;;  %v162_v13 = vld [vmem:[#allocation2 + $0x48] sm:$0xff]  ;;  %v161_v15 = vld [vmem:[#allocation2 + $0x40] sm:$0xff]  ;;  %v177_v16 = vld [vmem:[#allocation2 + $0xb8] sm:$0xff]  ;;  %vm360_vm3 = vcmp.lt.s32.totalorder %v1544_v27, 7  ;;  %v73_v3 = vadd.s32 8, %v1544_v27 }
  0x2a   :  { %1165 = vmatprep.subr.mxu1 %v166_v5  ;;  %1128 = vmatpush3.msra.mxu0 %v183_v4  ;;  %v160_v17 = vld [vmem:[#allocation2 + $0x38] sm:$0xff]  ;;  %v176_v18 = vld [vmem:[#allocation2 + $0xb0] sm:$0xff]  ;;  %v175_v20 = vld [vmem:[#allocation2 + $0xa8] sm:$0xff]  ;;  %v94_v44 = vand.u32 15, %v74_v33  ;;  %vm1573_vm1 = vcmp.ne.s32.totalorder %v80_v36, 0 }
  0x2b   :  { %1166 = vmatpush3.msra.mxu1 %v166_v5  ;;  %1129 = vmatprep.subr.mxu0 %v182_v6  ;;  %v159_v19 = vld [vmem:[#allocation2 + $0x30] sm:$0xff]  ;;  %v158_v21 = vld [vmem:[#allocation2 + $0x28] sm:$0xff]  ;;  %v174_v23 = vld [vmem:[#allocation2 + $0xa0] sm:$0xff] }
  0x2c   :  { %1167 = vmatprep.subr.mxu1 %v165_v7  ;;  %1130 = vmatpush3.msra.mxu0 %v182_v6  ;;  %v157_v24 = vld [vmem:[#allocation2 + $0x20] sm:$0xff]  ;;  %v173_v25 = vld [vmem:[#allocation2 + $0x98] sm:$0xff]  ;;  %v172_v30 = vld [vmem:[#allocation2 + $0x90] sm:$0xff]  ;;  %vm1584_vm2 = vcmp.ne.s32.totalorder %v94_v44, 0 }
  0x2d   :  { %1168 = vmatpush3.msra.mxu1 %v165_v7  ;;  %1131 = vmatprep.subr.mxu0 %v181_v8  ;;  %v156_v26 = vld [vmem:[#allocation2 + $0x18] sm:$0xff]  ;;  %v1549_v28 = vld [vmem:[%s1775_s0] sm:$0xff]  ;;  %v155_v31 = vld [vmem:[#allocation2 + $0x10] sm:$0xff]  ;;  %v87_v7 = vand.u32 15, %v73_v3 }
  0x2e   :  { %1169 = vmatprep.subr.mxu1 %v164_v9  ;;  %1132 = vmatpush3.msra.mxu0 %v181_v8  ;;  %v1554_v29 = vld [vmem:[%s1775_s0 + $0x18] sm:$0xff]  ;;  %v1559_v32 = vld [vmem:[%s1775_s0 + $0x8] sm:$0xff]  ;;  %v132_v37 = vrot.slane %v1549_v28, 7  ;;  %v1568_v39 = vld [vmem:[%s1775_s0 + $0x10] sm:$0xff]  ;;  %v356_v51 = vrot.slane %v1549_v28, 1  ;;  %v75_v8 = vadd.s32 24, %v1544_v27 }
  0x2f   :  { %1170 = vmatpush3.msra.mxu1 %v164_v9  ;;  %1133 = vmatprep.subr.mxu0 %v180_v10  ;;  %v171_v34 = vld [vmem:[#allocation2 + $0x88] sm:$0xff]  ;;  %v135_v38 = vrot.slane %v1554_v29, 7  ;;  %v133_v40 = vrot.slane %v1559_v32, 7  ;;  %v170_v41 = vld [vmem:[#allocation2 + $0x80] sm:$0xff]  ;;  %v134_v43 = vrot.slane %v1568_v39, 7  ;;  %v393_v48 = vld [vmem:[#allocation2 + $0x178] sm:$0xff] }
  0x30   :  { %1171 = vmatprep.subr.mxu1 %v163_v11  ;;  %1134 = vmatpush3.msra.mxu0 %v180_v10  ;;  %v154_v35 = vld [vmem:[#allocation2 + $0x8] sm:$0xff]  ;;  %v153_v42 = vld [vmem:[#allocation2] sm:$0xff]  ;;  %v357_v52 = vrot.slane %v1559_v32, 1  ;;  %v392_v53 = vld [vmem:[#allocation2 + $0x170] sm:$0xff]  ;;  %v358_v5 = vrot.slane %v1568_v39, 1  ;;  %v359_v9 = vrot.slane %v1554_v29, 1 }
  0x31   :  { %1172 = vmatpush3.msra.mxu1 %v163_v11  ;;  %1135 = vmatprep.subr.mxu0 %v179_v12  ;;  %v140_v46 = vsel %vm136_vm0, %v135_v38, %v132_v37  ;;  %v139_v47 = vsel %vm136_vm0, %v132_v37, %v133_v40  ;;  %v138_v50 = vsel %vm136_vm0, %v133_v40, %v134_v43  ;;  %v391_v55 = vld [vmem:[#allocation2 + $0x168] sm:$0xff]  ;;  %v390_v57 = vld [vmem:[#allocation2 + $0x160] sm:$0xff]  ;;  %v389_v58 = vld [vmem:[#allocation2 + $0x158] sm:$0xff]  ;;  %vm1610_vm4 = vcmp.ne.s32.totalorder %v87_v7, 15 }
  0x32   :  { %1173 = vmatprep.subr.mxu1 %v162_v13  ;;  %1136 = vmatpush3.msra.mxu0 %v179_v12  ;;  %v137_v54 = vsel %vm136_vm0, %v134_v43, %v135_v38  ;;  %v363_v56 = vsel %vm360_vm3, %v356_v51, %v357_v52  ;;  %v388_v59 = vld [vmem:[#allocation2 + $0x150] sm:$0xff]  ;;  %v387_v60 = vld [vmem:[#allocation2 + $0x148] sm:$0xff]  ;;  %v386_v61 = vld [vmem:[#allocation2 + $0x140] sm:$0xff]  ;;  %v362_v12 = vsel %vm360_vm3, %v357_v52, %v358_v5 }
  0x33   :  { %1174 = vmatpush3.msra.mxu1 %v162_v13  ;;  %1137 = vmatprep.subr.mxu0 %v178_v14  ;;  %v385_v62 = vld [vmem:[#allocation2 + $0x138] sm:$0xff]  ;;  %v384_v63 = vld [vmem:[#allocation2 + $0x130] sm:$0xff]  ;;  %v383_v0 = vld [vmem:[#allocation2 + $0x128] sm:$0xff]  ;;  %v101_v13 = vand.u32 15, %v75_v8 }
  0x34   :  { %1175 = vmatprep.subr.mxu1 %v161_v15  ;;  %1138 = vmatpush3.msra.mxu0 %v178_v14  ;;  %v382_v1 = vld [vmem:[#allocation2 + $0x120] sm:$0xff]  ;;  %v381_v2 = vld [vmem:[#allocation2 + $0x118] sm:$0xff]  ;;  %v380_v4 = vld [vmem:[#allocation2 + $0x110] sm:$0xff]  ;;  %v361_v14 = vsel %vm360_vm3, %v358_v5, %v359_v9 }
  0x35   :  { %1176 = vmatpush3.msra.mxu1 %v161_v15  ;;  %1139 = vmatprep.subr.mxu0 %v177_v16  ;;  %v379_v6 = vld [vmem:[#allocation2 + $0x108] sm:$0xff]  ;;  %v378_v10 = vld [vmem:[#allocation2 + $0x100] sm:$0xff]  ;;  %vm1622_vm5 = vcmp.ne.s32.totalorder %v101_v13, 15  ;;  %v534_v37 = vld [vmem:[#allocation4 + $0xb8] sm:$0xff] }
  0x36   :  { %1177 = vmatprep.subr.mxu1 %v160_v17  ;;  %1140 = vmatpush3.msra.mxu0 %v177_v16  ;;  %v364_v16 = vsel %vm360_vm3, %v359_v9, %v356_v51  ;;  %v523_v22 = vld [vmem:[#allocation4 + $0x68] sm:$0xff]  ;;  %v518_v36 = vld [vmem:[#allocation4 + $0x40] sm:$0xff]  ;;  %v517_v38 = vld [vmem:[#allocation4 + $0x38] sm:$0xff] }
  0x37   :  { %1178 = vmatpush3.msra.mxu1 %v160_v17  ;;  %1141 = vmatprep.subr.mxu0 %v176_v18  ;;  %v542_v17 = vld [vmem:[#allocation4 + $0xf8] sm:$0xff]  ;;  %v536_v33 = vld [vmem:[#allocation4 + $0xc8] sm:$0xff]  ;;  %v533_v40 = vld [vmem:[#allocation4 + $0xb0] sm:$0xff] }
  0x38   :  { %1179 = vmatprep.subr.mxu1 %v159_v19  ;;  %1142 = vmatpush3.msra.mxu0 %v176_v18  ;;  %v541_v18 = vld [vmem:[#allocation4 + $0xf0] sm:$0xff]  ;;  %v530_v44 = vld [vmem:[#allocation4 + $0x98] sm:$0xff]  ;;  %v527_v52 = vld [vmem:[#allocation4 + $0x80] sm:$0xff] }
  0x39   :  { %1180 = vmatpush3.msra.mxu1 %v159_v19  ;;  %1143 = vmatprep.subr.mxu0 %v175_v20  ;;  %v525_v19 = vld [vmem:[#allocation4 + $0x78] sm:$0xff]  ;;  %v516_v43 = vld [vmem:[#allocation4 + $0x30] sm:$0xff]  ;;  %v976_v5 = vld [vmem:[%s1779_s4] ss:$0 sm:$0xff] }
  0x3a   :  { %1181 = vmatprep.subr.mxu1 %v158_v21  ;;  %1144 = vmatpush3.msra.mxu0 %v175_v20  ;;  %v524_v20 = vld [vmem:[#allocation4 + $0x70] sm:$0xff]  ;;  %v513_v51 = vld [vmem:[#allocation4 + $0x18] sm:$0xff]  ;;  %v735_v49 = vld [vmem:[#allocation4 + $0x148] sm:$0xff] }
  0x3b   :  { %1182 = vmatpush3.msra.mxu1 %v158_v21  ;;  %1145 = vmatprep.subr.mxu0 %v174_v23  ;;  %v540_v21 = vld [vmem:[#allocation4 + $0xe8] sm:$0xff]  ;;  %v737_v45 = vld [vmem:[#allocation4 + $0x158] sm:$0xff] }
  0x3c   :  { %1183 = vmatprep.subr.mxu1 %v157_v24  ;;  %1146 = vmatpush3.msra.mxu0 %v174_v23  ;;  %v539_v23 = vld [vmem:[#allocation4 + $0xe0] sm:$0xff] }
  0x3d   :  { %1184 = vmatpush3.msra.mxu1 %v157_v24  ;;  %1147 = vmatprep.subr.mxu0 %v173_v25  ;;  %v522_v24 = vld [vmem:[#allocation4 + $0x60] sm:$0xff] }
  0x3e   :  { %1185 = vmatprep.subr.mxu1 %v156_v26  ;;  %1148 = vmatpush3.msra.mxu0 %v173_v25  ;;  %v538_v25 = vld [vmem:[#allocation4 + $0xd8] sm:$0xff] }
  0x3f   :  { %1186 = vmatpush3.msra.mxu1 %v156_v26  ;;  %1149 = vmatprep.subr.mxu0 %v172_v30  ;;  %v521_v26 = vld [vmem:[#allocation4 + $0x58] sm:$0xff] }
  0x40   :  { %1187 = vmatprep.subr.mxu1 %v155_v31  ;;  %1150 = vmatpush3.msra.mxu0 %v172_v30  ;;  %v537_v30 = vld [vmem:[#allocation4 + $0xd0] sm:$0xff] }
  0x41   :  { %1188 = vmatpush3.msra.mxu1 %v155_v31  ;;  %1151 = vmatprep.subr.mxu0 %v171_v34  ;;  %v520_v31 = vld [vmem:[#allocation4 + $0x50] sm:$0xff] }
  0x42   :  { %1189 = vmatprep.subr.mxu1 %v154_v35  ;;  %1152 = vmatpush3.msra.mxu0 %v171_v34  ;;  %v519_v34 = vld [vmem:[#allocation4 + $0x48] sm:$0xff] }
  0x43   :  { %1190 = vmatpush3.msra.mxu1 %v154_v35  ;;  %1153 = vmatprep.subr.mxu0 %v170_v41  ;;  %v535_v35 = vld [vmem:[#allocation4 + $0xc0] sm:$0xff] }
  0x44   :  { %1191 = vmatprep.subr.mxu1 %v153_v42  ;;  %1154 = vmatpush3.msra.mxu0 %v170_v41  ;;  %v532_v41 = vld [vmem:[#allocation4 + $0xa8] sm:$0xff] }
  0x45   :  { %1155 = vmatprep.mubr.f32.mxu0 %v1549_v28  ;;  %1192 = vmatpush3.msra.mxu1 %v153_v42  ;;  %v531_v42 = vld [vmem:[#allocation4 + $0xa0] sm:$0xff] }
  0x46   :  { %1193 = vmatprep.mubr.msk.f32.mxu1 %vm1573_vm1, %v140_v46  ;;  %1156 = vmatmul.mubr.f32.vlgmr.msra.gmra.mxu0 %v1559_v32  ;;  %v515_v46 = vld [vmem:[#allocation4 + $0x28] sm:$0xff] }
  0x47   :  { %1194 = vmatmul.mubr.f32.vlgmr.msra.gmra.mxu1 %v139_v47  ;;  %1199 = vmatprep.subr.mxu0 %v393_v48  ;;  %v529_v47 = vld [vmem:[#allocation4 + $0x90] sm:$0xff] }
  0x48   :  { %1158 = vmatprep.mubr.f32.mxu0 %v1568_v39  ;;  %1200 = vmatpush3.msra.mxu0 %v393_v48  ;;  %v514_v48 = vld [vmem:[#allocation4 + $0x20] sm:$0xff] }
  0x49   :  { %1196 = vmatprep.mubr.msk.f32.mxu1 %vm1584_vm2, %v138_v50  ;;  %1201 = vmatprep.subr.mxu0 %v392_v53  ;;  %v528_v50 = vld [vmem:[#allocation4 + $0x88] sm:$0xff] }
  0x4a   :  { %1202 = vmatpush3.msra.mxu0 %v392_v53  ;;  %1237 = vmatprep.subr.mxu1 %v542_v17  ;;  %v512_v53 = vld [vmem:[#allocation4 + $0x10] sm:$0xff] }
  0x4b   :  { %1197 = vmatmul.mubr.f32.gmra.mxu1 %v137_v54  ;;  %1203 = vmatprep.subr.mxu0 %v391_v55  ;;  %v741_v54 = vld [vmem:[#allocation4 + $0x178] sm:$0xff] }
  0x4c   :  { %1159 = vmatmul.mubr.f32.gmra.mxu0 %v1554_v29  ;;  %1238 = vmatpush3.msra.mxu1 %v542_v17 }
  0x4d   :  { %1204 = vmatpush3.msra.mxu0 %v391_v55  ;;  %1231 = vmatprep.mubr.f32.mxu0 %v363_v56  ;;  %v511_v55 = vld [vmem:[#allocation4 + $0x8] sm:$0xff]  ;;  %v510_v56 = vld [vmem:[#allocation4] sm:$0xff] }
  0x4e   :  { %1205 = vmatprep.subr.mxu0 %v390_v57  ;;  %1239 = vmatprep.subr.mxu1 %v541_v18 }
  0x4f   :  { %1206 = vmatpush3.msra.mxu0 %v390_v57  ;;  %1240 = vmatpush3.msra.mxu1 %v541_v18  ;;  %v1632_v57 = vld [vmem:[#allocation6 + $0x78] sm:$0xff] }
  0x50   :  { %1207 = vmatprep.subr.mxu0 %v389_v58  ;;  %1241 = vmatprep.subr.mxu1 %v540_v21 }
  0x51   :  { %1208 = vmatpush3.msra.mxu0 %v389_v58  ;;  %1242 = vmatpush3.msra.mxu1 %v540_v21 }
  0x52   :  { %1209 = vmatprep.subr.mxu0 %v388_v59  ;;  %1243 = vmatprep.subr.mxu1 %v539_v23 }
  0x53   :  { %1210 = vmatpush3.msra.mxu0 %v388_v59  ;;  %1244 = vmatpush3.msra.mxu1 %v539_v23 }
  0x54   :  { %1211 = vmatprep.subr.mxu0 %v387_v60  ;;  %1245 = vmatprep.subr.mxu1 %v538_v25 }
  0x55   :  { %1212 = vmatpush3.msra.mxu0 %v387_v60  ;;  %1246 = vmatpush3.msra.mxu1 %v538_v25 }
  0x56   :  { %1213 = vmatprep.subr.mxu0 %v386_v61  ;;  %1247 = vmatprep.subr.mxu1 %v537_v30 }
  0x57   :  { %1214 = vmatpush3.msra.mxu0 %v386_v61  ;;  %1248 = vmatpush3.msra.mxu1 %v537_v30 }
  0x58   :  { %1215 = vmatprep.subr.mxu0 %v385_v62  ;;  %1249 = vmatprep.subr.mxu1 %v536_v33 }
  0x59   :  { %1216 = vmatpush3.msra.mxu0 %v385_v62  ;;  %1250 = vmatpush3.msra.mxu1 %v536_v33 }
  0x5a   :  { %1217 = vmatprep.subr.mxu0 %v384_v63  ;;  %1251 = vmatprep.subr.mxu1 %v535_v35 }
  0x5b   :  { %1218 = vmatpush3.msra.mxu0 %v384_v63  ;;  %1252 = vmatpush3.msra.mxu1 %v535_v35 }
  0x5c   :  { %1219 = vmatprep.subr.mxu0 %v383_v0  ;;  %1253 = vmatprep.subr.mxu1 %v534_v37 }
  0x5d   :  { %1220 = vmatpush3.msra.mxu0 %v383_v0  ;;  %1254 = vmatpush3.msra.mxu1 %v534_v37  ;;  %v738_v37 = vld [vmem:[#allocation4 + $0x160] sm:$0xff] }
  0x5e   :  { %1221 = vmatprep.subr.mxu0 %v382_v1  ;;  %1255 = vmatprep.subr.mxu1 %v533_v40 }
  0x5f   :  { %1222 = vmatpush3.msra.mxu0 %v382_v1  ;;  %1256 = vmatpush3.msra.mxu1 %v533_v40 }
  0x60   :  { %1223 = vmatprep.subr.mxu0 %v381_v2  ;;  %1257 = vmatprep.subr.mxu1 %v532_v41 }
  0x61   :  { %1224 = vmatpush3.msra.mxu0 %v381_v2  ;;  %1258 = vmatpush3.msra.mxu1 %v532_v41 }
  0x62   :  { %1225 = vmatprep.subr.mxu0 %v380_v4  ;;  %1259 = vmatprep.subr.mxu1 %v531_v42 }
  0x63   :  { %1226 = vmatpush3.msra.mxu0 %v380_v4  ;;  %1260 = vmatpush3.msra.mxu1 %v531_v42 }
  0x64   :  { %1227 = vmatprep.subr.mxu0 %v379_v6  ;;  %1261 = vmatprep.subr.mxu1 %v530_v44 }
  0x65   :  { %1228 = vmatpush3.msra.mxu0 %v379_v6  ;;  %1262 = vmatpush3.msra.mxu1 %v530_v44  ;;  %v1675_v44 = vld [vmem:[#allocation6 + $0x68] sm:$0xff] }
  0x66   :  { %1229 = vmatprep.subr.mxu0 %v378_v10  ;;  %1263 = vmatprep.subr.mxu1 %v529_v47 }
  0x67   :  { %1230 = vmatpush3.msra.mxu0 %v378_v10  ;;  %1264 = vmatpush3.msra.mxu1 %v529_v47 }
  0x68   :  { %1232 = vmatmul.mubr.msk.f32.vlgmr.msra.gmra.mxu0 %vm1610_vm4, %v362_v12  ;;  %1275 = vmatprep.subr.mxu0 %v525_v19 }
  0x69   :  { %1234 = vmatprep.mubr.f32.mxu0 %v361_v14  ;;  %1276 = vmatpush3.msra.mxu0 %v525_v19 }
  0x6a   :  { %1277 = vmatprep.subr.mxu0 %v524_v20  ;;  %1265 = vmatprep.subr.mxu1 %v528_v50 }
  0x6b   :  { %1278 = vmatpush3.msra.mxu0 %v524_v20  ;;  %1266 = vmatpush3.msra.mxu1 %v528_v50  ;;  %v1685_v50 = vld [vmem:[#allocation6 + $0x58] sm:$0xff] }
  0x6c   :  { %1235 = vmatmul.mubr.msk.f32.gmra.mxu0 %vm1622_vm5, %v364_v16  ;;  %1279 = vmatprep.subr.mxu0 %v523_v22 }
  0x6d   :  { %1280 = vmatpush3.msra.mxu0 %v523_v22  ;;  %1267 = vmatprep.subr.mxu1 %v527_v52 }
  0x6e   :  { %1281 = vmatprep.subr.mxu0 %v522_v24  ;;  %1268 = vmatpush3.msra.mxu1 %v527_v52  ;;  %v1689_v52 = vld [vmem:[#allocation6 + $0x50] sm:$0xff] }
  0x6f   :  { %1282 = vmatpush3.msra.mxu0 %v522_v24  ;;  %1313 = vmatprep.subr.mxu1 %v741_v54  ;;  %v740_v24 = vld [vmem:[#allocation4 + $0x170] sm:$0xff] }
  0x70   :  { %1283 = vmatprep.subr.mxu0 %v521_v26 }
  0x71   :  { %1284 = vmatpush3.msra.mxu0 %v521_v26 }
  0x72   :  { %1285 = vmatprep.subr.mxu0 %v520_v31 }
  0x73   :  { %1286 = vmatpush3.msra.mxu0 %v520_v31  ;;  %v739_v31 = vld [vmem:[#allocation4 + $0x168] sm:$0xff] }
  0x74   :  { %1287 = vmatprep.subr.mxu0 %v519_v34 }
  0x75   :  { %1288 = vmatpush3.msra.mxu0 %v519_v34 }
  0x76   :  { %1289 = vmatprep.subr.mxu0 %v518_v36 }
  0x77   :  { %1290 = vmatpush3.msra.mxu0 %v518_v36 }
  0x78   :  { %1291 = vmatprep.subr.mxu0 %v517_v38 }
  0x79   :  { %1292 = vmatpush3.msra.mxu0 %v517_v38 }
  0x7a   :  { %1293 = vmatprep.subr.mxu0 %v516_v43 }
  0x7b   :  { %1294 = vmatpush3.msra.mxu0 %v516_v43  ;;  %v1670_v43 = vld [vmem:[#allocation6 + $0x70] sm:$0xff] }
  0x7c   :  { %1295 = vmatprep.subr.mxu0 %v515_v46 }
  0x7d   :  { %1296 = vmatpush3.msra.mxu0 %v515_v46  ;;  %v736_v46 = vld [vmem:[#allocation4 + $0x150] sm:$0xff] }
  0x7e   :  { %1297 = vmatprep.subr.mxu0 %v514_v48 }
  0x7f   :  { %1298 = vmatpush3.msra.mxu0 %v514_v48  ;;  %v1681_v48 = vld [vmem:[#allocation6 + $0x60] sm:$0xff] }
  0x80   :  { %1299 = vmatprep.subr.mxu0 %v513_v51 }
  0x81   :  { %1300 = vmatpush3.msra.mxu0 %v513_v51  ;;  %v734_v51 = vld [vmem:[#allocation4 + $0x140] sm:$0xff] }
  0x82   :  { %1301 = vmatprep.subr.mxu0 %v512_v53 }
  0x83   :  { %1302 = vmatpush3.msra.mxu0 %v512_v53  ;;  %v733_v53 = vld [vmem:[#allocation4 + $0x138] sm:$0xff] }
  0x84   :  { %1303 = vmatprep.subr.mxu0 %v511_v55 }
  0x85   :  { %1304 = vmatpush3.msra.mxu0 %v511_v55  ;;  %v732_v55 = vld [vmem:[#allocation4 + $0x130] sm:$0xff] }
  0x86   :  { %1305 = vmatprep.subr.mxu0 %v510_v56 }
  0x87   :  { %1306 = vmatpush3.msra.mxu0 %v510_v56  ;;  %v1697_v56 = vld [vmem:[#allocation6 + $0x40] sm:$0xff] }
  0x88   :  { %1351 = vmatprep.subr.mxu0 %v1632_v57 }
 0x106   :  { %v1157_v58 = vpop.f32.mrf.mxu0 }
 0x107   :  { %v1195_v59 = vpop.f32.mrf.mxu1 }
 0x108   :  { %v252_v60 = vpop.f32.mrf.mxu0  ;;  %v343_v1 = vadd.f32 %v1195_v59, %v1157_v58  ;;  %v731_v58 = vld [vmem:[#allocation4 + $0x128] sm:$0xff]  ;;  %v1701_v59 = vld [vmem:[#allocation6 + $0x38] sm:$0xff] }
 0x109   :  { %v337_v62 = vpop.f32.mrf.mxu1 }
 0x10a   :  { %v338_v3 = vadd.f32 %v337_v62, %v252_v60  ;;  %v730_v60 = vld [vmem:[#allocation4 + $0x120] sm:$0xff]  ;;  %v729_v62 = vld [vmem:[#allocation4 + $0x118] sm:$0xff] }
 0x10b   :  { %v1198_v63 = vpop.f32.mrf.mxu1 }
 0x10c   :  { %v1160_v61 = vpop.f32.mrf.mxu0 }
 0x10d   :  { %v347_v6 = vpop.f32.mrf.mxu1  ;;  %v353_v8 = vadd.f32 %v1198_v63, %v1160_v61  ;;  %v1705_v61 = vld [vmem:[#allocation6 + $0x30] sm:$0xff]  ;;  %v1709_v63 = vld [vmem:[#allocation6 + $0x28] sm:$0xff] }
 0x10e   :  { %v262_v0 = vpop.f32.mrf.mxu0 }
 0x10f   :  { %v348_v13 = vadd.f32 %v347_v6, %v262_v0  ;;  %v728_v0 = vld [vmem:[#allocation4 + $0x110] sm:$0xff] }
 0x110   :  { %v844_v6 = vld [vmem:[#allocation6 + $0x10] sm:$0xff] }
 0x128   :  { %v1233_v2 = vpop.f32.mrf.mxu0 }
 0x129   :  { %v480_v4 = vadd.f32 %v1233_v2, %v343_v1  ;;  %v846_v1 = vld [vmem:[#allocation6 + $0x20] sm:$0xff]  ;;  %v727_v2 = vld [vmem:[#allocation4 + $0x108] sm:$0xff] }
 0x12a   :  { %v460_v7 = vpop.f32.mrf.mxu0 }
 0x12b   :  { %v479_v9 = vadd.f32 %v460_v7, %v338_v3  ;;  %v491_v10 = vadd.f32 %v976_v5, %v480_v4  ;;  %v845_v3 = vld [vmem:[#allocation6 + $0x18] sm:$0xff] }
 0x12c   :  { %v1236_v12 = vpop.f32.mrf.mxu0 }
 0x12d   :  { %v490_v14 = vadd.f32 %v976_v5, %v479_v9  ;;  %v482_v16 = vadd.f32 %v1236_v12, %v353_v8  ;;  %v1640_v21 = vmax.f32 %v491_v10, 0.0  ;;  %v843_v9 = vld [vmem:[#allocation6 + $0x8] sm:$0xff]  ;;  %v842_v12 = vld [vmem:[#allocation6] sm:$0xff] }
 0x12e   :  { %v470_v17 = vpop.f32.mrf.mxu0 }
 0x12f   :  { %v1638_v18 = vmax.f32 %v490_v14, 0.0  ;;  %v493_v19 = vadd.f32 %v976_v5, %v482_v16  ;;  %v481_v20 = vadd.f32 %v470_v17, %v348_v13  ;;  %v499_v34 = vrot.slane %v1640_v21, 7 }
 0x130   :  { %v714_v38 = vrot.slane %v1640_v21, 1 }
 0x131   :  { %v1642_v22 = vmax.f32 %v493_v19, 0.0  ;;  %v492_v23 = vadd.f32 %v976_v5, %v481_v20  ;;  %1269 = vmatprep.mubr.f32.mxu1 %v1638_v18  ;;  %v498_v25 = vrot.slane %v1638_v18, 7  ;;  %v713_v33 = vrot.slane %v1638_v18, 1  ;;  %v726_v5 = vld [vmem:[#allocation4 + $0x100] sm:$0xff] }
 0x132   :  { %1270 = vmatmul.mubr.f32.vlgmr.msra.gmra.mxu1 %v1640_v21  ;;  %v981_v19 = vld [vmem:[%s1780_s5] ss:$0 sm:$0xff] }
 0x133   :  { %v501_v26 = vrot.slane %v1642_v22, 7  ;;  %v1648_v30 = vmax.f32 %v492_v23, 0.0  ;;  %1314 = vmatpush3.msra.mxu1 %v741_v54  ;;  %v504_v40 = vsel %vm136_vm0, %v498_v25, %v499_v34  ;;  %v719_v42 = vsel %vm360_vm3, %v713_v33, %v714_v38  ;;  %v1693_v54 = vld [vmem:[#allocation6 + $0x48] sm:$0xff] }
 0x134   :  { %1315 = vmatprep.subr.mxu1 %v740_v24  ;;  %v716_v7 = vrot.slane %v1642_v22, 1 }
 0x135   :  { %v500_v35 = vrot.slane %v1648_v30, 7  ;;  %1316 = vmatpush3.msra.mxu1 %v740_v24  ;;  %1272 = vmatprep.mubr.f32.mxu1 %v1648_v30  ;;  %v505_v36 = vsel %vm136_vm0, %v501_v26, %v498_v25  ;;  %v715_v4 = vrot.slane %v1648_v30, 1  ;;  %v982_v25 = vld [vmem:[%s1781_s6] ss:$0 sm:$0xff] }
 0x136   :  { %1317 = vmatprep.subr.mxu1 %v739_v31  ;;  %1273 = vmatmul.mubr.f32.gmra.mxu1 %v1642_v22  ;;  %v720_v11 = vsel %vm360_vm3, %v716_v7, %v713_v33 }
 0x137   :  { %1307 = vmatprep.mubr.msk.f32.mxu0 %vm1573_vm1, %v505_v36  ;;  %1318 = vmatpush3.msra.mxu1 %v739_v31  ;;  %v503_v41 = vsel %vm136_vm0, %v499_v34, %v500_v35  ;;  %v502_v47 = vsel %vm136_vm0, %v500_v35, %v501_v26  ;;  %v718_v8 = vsel %vm360_vm3, %v714_v38, %v715_v4 }
 0x138   :  { %1308 = vmatmul.mubr.f32.vlgmr.msra.gmra.mxu0 %v504_v40  ;;  %1319 = vmatprep.subr.mxu1 %v738_v37  ;;  %v717_v10 = vsel %vm360_vm3, %v715_v4, %v716_v7 }
 0x139   :  { %1345 = vmatprep.mubr.f32.mxu1 %v719_v42  ;;  %1352 = vmatpush3.msra.mxu0 %v1632_v57 }
 0x13a   :  { %1310 = vmatprep.mubr.msk.f32.mxu0 %vm1584_vm2, %v503_v41  ;;  %1320 = vmatpush3.msra.mxu1 %v738_v37 }
 0x13b   :  { %1353 = vmatprep.subr.mxu0 %v1670_v43  ;;  %1321 = vmatprep.subr.mxu1 %v737_v45 }
 0x13c   :  { %1354 = vmatpush3.msra.mxu0 %v1670_v43  ;;  %1322 = vmatpush3.msra.mxu1 %v737_v45 }
 0x13d   :  { %1355 = vmatprep.subr.mxu0 %v1675_v44  ;;  %1311 = vmatmul.mubr.f32.gmra.mxu0 %v502_v47 }
 0x13e   :  { %1323 = vmatprep.subr.mxu1 %v736_v46  ;;  %1356 = vmatpush3.msra.mxu0 %v1675_v44 }
 0x13f   :  { %1324 = vmatpush3.msra.mxu1 %v736_v46  ;;  %1357 = vmatprep.subr.mxu0 %v1681_v48 }
 0x140   :  { %1325 = vmatprep.subr.mxu1 %v735_v49  ;;  %1358 = vmatpush3.msra.mxu0 %v1681_v48 }
 0x141   :  { %1326 = vmatpush3.msra.mxu1 %v735_v49  ;;  %1359 = vmatprep.subr.mxu0 %v1685_v50 }
 0x142   :  { %1327 = vmatprep.subr.mxu1 %v734_v51  ;;  %1360 = vmatpush3.msra.mxu0 %v1685_v50 }
 0x143   :  { %1328 = vmatpush3.msra.mxu1 %v734_v51  ;;  %1361 = vmatprep.subr.mxu0 %v1689_v52 }
 0x144   :  { %1329 = vmatprep.subr.mxu1 %v733_v53  ;;  %1362 = vmatpush3.msra.mxu0 %v1689_v52 }
 0x145   :  { %1330 = vmatpush3.msra.mxu1 %v733_v53  ;;  %1363 = vmatprep.subr.mxu0 %v1693_v54 }
 0x146   :  { %1331 = vmatprep.subr.mxu1 %v732_v55  ;;  %1364 = vmatpush3.msra.mxu0 %v1693_v54 }
 0x147   :  { %1332 = vmatpush3.msra.mxu1 %v732_v55  ;;  %1365 = vmatprep.subr.mxu0 %v1697_v56 }
 0x148   :  { %1333 = vmatprep.subr.mxu1 %v731_v58  ;;  %1366 = vmatpush3.msra.mxu0 %v1697_v56 }
 0x149   :  { %1334 = vmatpush3.msra.mxu1 %v731_v58  ;;  %1367 = vmatprep.subr.mxu0 %v1701_v59 }
 0x14a   :  { %1335 = vmatprep.subr.mxu1 %v730_v60  ;;  %1368 = vmatpush3.msra.mxu0 %v1701_v59 }
 0x14b   :  { %1336 = vmatpush3.msra.mxu1 %v730_v60  ;;  %1369 = vmatprep.subr.mxu0 %v1705_v61 }
 0x14c   :  { %1337 = vmatprep.subr.mxu1 %v729_v62  ;;  %1370 = vmatpush3.msra.mxu0 %v1705_v61 }
 0x14d   :  { %1338 = vmatpush3.msra.mxu1 %v729_v62  ;;  %1371 = vmatprep.subr.mxu0 %v1709_v63 }
 0x14e   :  { %1339 = vmatprep.subr.mxu1 %v728_v0  ;;  %1372 = vmatpush3.msra.mxu0 %v1709_v63 }
 0x14f   :  { %1340 = vmatpush3.msra.mxu1 %v728_v0  ;;  %1373 = vmatprep.subr.mxu0 %v846_v1 }
 0x150   :  { %1341 = vmatprep.subr.mxu1 %v727_v2  ;;  %1374 = vmatpush3.msra.mxu0 %v846_v1 }
 0x151   :  { %1342 = vmatpush3.msra.mxu1 %v727_v2  ;;  %1375 = vmatprep.subr.mxu0 %v845_v3 }
 0x152   :  { %1343 = vmatprep.subr.mxu1 %v726_v5  ;;  %1376 = vmatpush3.msra.mxu0 %v845_v3 }
 0x153   :  { %1344 = vmatpush3.msra.mxu1 %v726_v5  ;;  %1377 = vmatprep.subr.mxu0 %v844_v6 }
 0x154   :  { %1346 = vmatmul.mubr.msk.f32.vlgmr.msra.gmra.mxu1 %vm1610_vm4, %v718_v8  ;;  %1389 = vmatprep.subr.mxu1 %v1632_v57 }
 0x155   :  { %1378 = vmatpush3.msra.mxu0 %v844_v6  ;;  %1348 = vmatprep.mubr.f32.mxu1 %v717_v10 }
 0x156   :  { %1405 = vmatpush3.msra.mxu1 %v1632_v57  ;;  %1379 = vmatprep.subr.mxu0 %v843_v9 }
 0x157   :  { %1390 = vmatprep.subr.mxu1 %v1670_v43  ;;  %1380 = vmatpush3.msra.mxu0 %v843_v9 }
 0x158   :  { %1406 = vmatpush3.msra.mxu1 %v1670_v43  ;;  %1381 = vmatprep.subr.mxu0 %v842_v12 }
 0x159   :  { %1349 = vmatmul.mubr.msk.f32.gmra.mxu1 %vm1622_vm5, %v720_v11  ;;  %1391 = vmatprep.subr.mxu1 %v1675_v44 }
 0x15a   :  { %1382 = vmatpush3.msra.mxu0 %v842_v12  ;;  %1383 = vmatprep.mubr.f32.mxu0 %v1549_v28 }
 0x15b   :  { %1407 = vmatpush3.msra.mxu1 %v1675_v44  ;;  %1384 = vmatmul.mubr.f32.vlgmr.msra.gmra.mxu0 %v1559_v32 }
 0x15c   :  { %1392 = vmatprep.subr.mxu1 %v1681_v48  ;;  %1386 = vmatprep.mubr.f32.mxu1 %v1568_v39 }
 0x15d   :  { %1408 = vmatpush3.msra.mxu1 %v1681_v48 }
 0x15e   :  { %1393 = vmatprep.subr.mxu1 %v1685_v50 }
 0x15f   :  { %1409 = vmatpush3.msra.mxu1 %v1685_v50 }
 0x160   :  { %1394 = vmatprep.subr.mxu1 %v1689_v52 }
 0x161   :  { %1410 = vmatpush3.msra.mxu1 %v1689_v52 }
 0x162   :  { %1395 = vmatprep.subr.mxu1 %v1693_v54 }
 0x163   :  { %1411 = vmatpush3.msra.mxu1 %v1693_v54 }
 0x164   :  { %1396 = vmatprep.subr.mxu1 %v1697_v56 }
 0x165   :  { %1412 = vmatpush3.msra.mxu1 %v1697_v56 }
 0x166   :  { %1397 = vmatprep.subr.mxu1 %v1701_v59 }
 0x167   :  { %1413 = vmatpush3.msra.mxu1 %v1701_v59 }
 0x168   :  { %1398 = vmatprep.subr.mxu1 %v1705_v61 }
 0x169   :  { %1414 = vmatpush3.msra.mxu1 %v1705_v61 }
 0x16a   :  { %1399 = vmatprep.subr.mxu1 %v1709_v63 }
 0x16b   :  { %1415 = vmatpush3.msra.mxu1 %v1709_v63 }
 0x16c   :  { %1400 = vmatprep.subr.mxu1 %v846_v1 }
 0x16d   :  { %1416 = vmatpush3.msra.mxu1 %v846_v1 }
 0x16e   :  { %1401 = vmatprep.subr.mxu1 %v845_v3 }
 0x16f   :  { %1417 = vmatpush3.msra.mxu1 %v845_v3 }
 0x170   :  { %1402 = vmatprep.subr.mxu1 %v844_v6 }
 0x171   :  { %1418 = vmatpush3.msra.mxu1 %v844_v6 }
 0x172   :  { %1403 = vmatprep.subr.mxu1 %v843_v9 }
 0x173   :  { %1419 = vmatpush3.msra.mxu1 %v843_v9 }
 0x174   :  { %1404 = vmatprep.subr.mxu1 %v842_v12 }
 0x175   :  { %1420 = vmatpush3.msra.mxu1 %v842_v12 }
 0x176   :  { %1387 = vmatmul.mubr.f32.vlgmr.msra.gmra.mxu1 %v1554_v29 }
 0x1f2   :  { %v1271_v27 = vpop.f32.mrf.mxu1 }
 0x1f4   :  { %v609_v28 = vpop.f32.mrf.mxu1 }
 0x1f6   :  { %v1274_v39 = vpop.f32.mrf.mxu1 }
 0x1f8   :  { %v1309_v32 = vpop.f32.mrf.mxu0  ;;  %v619_v57 = vpop.f32.mrf.mxu1 }
 0x1f9   :  { %v700_v13 = vadd.f32 %v1309_v32, %v1271_v27 }
 0x1fa   :  { %v694_v15 = vpop.f32.mrf.mxu0 }
 0x1fb   :  { %v695_v16 = vadd.f32 %v694_v15, %v609_v28 }
 0x1fd   :  { %v1312_v17 = vpop.f32.mrf.mxu0 }
 0x1fe   :  { %v710_v38 = vadd.f32 %v1312_v17, %v1274_v39 }
 0x1ff   :  { %v704_v23 = vpop.f32.mrf.mxu0 }
 0x200   :  { %v705_v41 = vadd.f32 %v704_v23, %v619_v57 }
 0x214   :  { %v1347_v14 = vpop.f32.mrf.mxu1 }
 0x215   :  { %v828_v18 = vadd.f32 %v1347_v14, %v700_v13 }
 0x216   :  { %v808_v20 = vpop.f32.mrf.mxu1 }
 0x217   :  { %v827_v21 = vadd.f32 %v808_v20, %v695_v16  ;;  %v839_v22 = vadd.f32 %v981_v19, %v828_v18 }
 0x219   :  { %v838_v29 = vadd.f32 %v981_v19, %v827_v21  ;;  %v1350_v37 = vpop.f32.mrf.mxu1 }
 0x21a   :  { %v830_v42 = vadd.f32 %v1350_v37, %v710_v38 }
 0x21b   :  { %v1385_v24 = vpop.f32.mrf.mxu0  ;;  %v818_v40 = vpop.f32.mrf.mxu1 }
 0x21c   :  { %v944_v26 = vadd.f32 %v1385_v24, %v839_v22  ;;  %v829_v43 = vadd.f32 %v818_v40, %v705_v41  ;;  %v841_v45 = vadd.f32 %v981_v19, %v830_v42 }
 0x21d   :  { %v924_v30 = vpop.f32.mrf.mxu0 }
 0x21e   :  { %v955_v31 = vadd.f32 %v982_v25, %v944_v26  ;;  %v943_v33 = vadd.f32 %v924_v30, %v838_v29  ;;  %v840_v47 = vadd.f32 %v981_v19, %v829_v43 }
 0x220   :  { %v959_v34 = vmax.f32 %v955_v31, 0.0  ;;  %v954_v35 = vadd.f32 %v982_v25, %v943_v33 }
 0x222   :  { %963 = vst [vmem:[%s1782_s7 + $0x8] sm:$0xff] %v959_v34  ;;  %v958_v36 = vmax.f32 %v954_v35, 0.0 }
 0x224   :  { %962 = vst [vmem:[%s1782_s7] sm:$0xff] %v958_v36 }
 0x236   :  { %v1388_v44 = vpop.f32.mrf.mxu1 }
 0x237   :  { %v946_v46 = vadd.f32 %v1388_v44, %v841_v45 }
 0x238   :  { %v934_v48 = vpop.f32.mrf.mxu1 }
 0x239   :  { %v957_v49 = vadd.f32 %v982_v25, %v946_v46  ;;  %v945_v50 = vadd.f32 %v934_v48, %v840_v47 }
 0x23b   :  { %v961_v51 = vmax.f32 %v957_v49, 0.0  ;;  %v956_v52 = vadd.f32 %v982_v25, %v945_v50 }
 0x23d   :  { %965 = vst [vmem:[%s1782_s7 + $0x18] sm:$0xff] %v961_v51  ;;  %v960_v53 = vmax.f32 %v956_v52, 0.0 }
 0x23f   :  { %964 = vst [vmem:[%s1782_s7 + $0x10] sm:$0xff] %v960_v53 }
 0x240   :  { %970 = vsyncpa [#allocation3], 1 }
 0x241   :  { %971 = vsyncpa [#allocation5], 1 }

// kernel: _apply_nlc.1
= control target key start
LH: loop header
LB: loop body
LE: loop exit
PB: predicated region body
PF: predicated region fallthrough
CT: control target
= control target key end

     0   :  { %12 = vsyncpa [#allocation3], 0  ;;  %s1775_s0 = inlined_call_operand.vmem [shape: f32[32,128], index: 0, kind: input, shape index: {}]   ;;  %s1776_s1 = inlined_call_operand.hbm [shape: f32[3,128,128], index: 1, kind: input, shape index: {}]   ;;  %s1777_s2 = inlined_call_operand.hbm [shape: f32[3,128,128], index: 2, kind: input, shape index: {}]   ;;  %s1778_s3 = inlined_call_operand.hbm [shape: f32[128,128], index: 3, kind: input, shape index: {}]   ;;  %s1779_s4 = inlined_call_operand.vmem [shape: f32[1,128], index: 4, kind: input, shape index: {}]   ;;  %s1780_s5 = inlined_call_operand.vmem [shape: f32[1,128], index: 5, kind: input, shape index: {}]   ;;  %s1781_s6 = inlined_call_operand.vmem [shape: f32[1,128], index: 6, kind: input, shape index: {}]   ;;  %s1782_s7 = inlined_call_operand.vmem [shape: f32[32,128], index: 7, kind: output, shape index: {}]  }
   0x1   :  { %13 = vsyncpa [#allocation5], 0  ;;  %s1490_s24 = smov [#allocation4]   ;;  %s1491_s26 = smov [#allocation2]  }
   0x2   :  { %s33_s25 = sshll.u32 %s1490_s24, 4  ;;  %s21_s27 = sshll.u32 %s1491_s26, 4  ;;  %s34_s25 = int_to_ptr.vmem [resolvable:$true] %s33_s25  ;;  %s22_s27 = int_to_ptr.vmem [resolvable:$true] %s21_s27 }
   0x3   :  { %s1434_s28 = scalar_lea.vmem %s34_s25, 6144  ;;  %p1439_p1 = scmp.lt.s32.totalorder %s34_s25, %s34_s25 }
   0x4   :  { %p1435_p0 = scmp.ne.s32.totalorder %s34_s25, %s1434_s28  ;;  %p1440_p2 = scmp.lt.s32.totalorder %s1434_s28, %s1434_s28 }
   0x6   :  { %p1441_p3 = por %p1440_p2, %p1439_p1 }
   0x8   :  { %p1442_p4 = pnand %p1441_p3, %p1435_p0 }
   0xa   :  { %1445 = shalt.err (!%p1442_p4)
}
   0xb   :  { %s1492_s29 = smov 128   ;;  %s1493_s30 = smov 8  }
   0xc   :  { %39 = dma.hbm_to_vmem [thread:$0]  %s1777_s2, 6144, %s34_s25, [#allocation5], %s1492_s29, %s1492_s29, %s1493_s30  }
   0xd   :  { %s1454_s10 = scalar_lea.vmem %s22_s27, 6144  ;;  %p1459_p6 = scmp.lt.s32.totalorder %s22_s27, %s22_s27 }
   0xe   :  { %p1455_p5 = scmp.ne.s32.totalorder %s22_s27, %s1454_s10  ;;  %p1460_p7 = scmp.lt.s32.totalorder %s1454_s10, %s1454_s10 }
  0x10   :  { %p1461_p8 = por %p1460_p7, %p1459_p6 }
  0x12   :  { %p1462_p9 = pnand %p1461_p8, %p1455_p5 }
  0x14   :  { %1465 = shalt.err (!%p1462_p9)
}
  0x15   :  { %27 = dma.hbm_to_vmem [thread:$0]  %s1776_s1, 6144, %s22_s27, [#allocation3], %s1492_s29, %s1492_s29, %s1493_s30  }
  0x16   :  { %s1494_s13 = smov [#allocation6]  }
  0x17   :  { %s45_s14 = sshll.u32 %s1494_s13, 4  ;;  %s46_s14 = int_to_ptr.vmem [resolvable:$true] %s45_s14 }
  0x18   :  { %s1474_s15 = scalar_lea.vmem %s46_s14, 2048  ;;  %p1479_p11 = scmp.lt.s32.totalorder %s46_s14, %s46_s14 }
  0x19   :  { %p1475_p10 = scmp.ne.s32.totalorder %s46_s14, %s1474_s15  ;;  %p1480_p12 = scmp.lt.s32.totalorder %s1474_s15, %s1474_s15 }
  0x1b   :  { %p1481_p13 = por %p1480_p12, %p1479_p11 }
  0x1d   :  { %p1482_p0 = pnand %p1481_p13, %p1475_p10 }
  0x1f   :  { %1485 = shalt.err (!%p1482_p0)
}
  0x20   :  { %51 = dma.hbm_to_vmem [thread:$0]  %s1778_s3, 2048, %s46_s14, [#allocation5], %s1492_s29, %s1492_s29, %s1493_s30  }
  0x21   :  { %1486 = dma.done.wait [#allocation3], 6144  }
  0x22   :  { %1487 = vsyncadd [#allocation3], 4294961152 }
  0x23   :  { %1488 = dma.done.wait [#allocation5], 8192  }
  0x24   :  { %1489 = vsyncadd [#allocation5], 4294959104  ;;  %v185_v0 = vld [vmem:[#allocation2 + $0xf8] sm:$0xff]  ;;  %v184_v2 = vld [vmem:[#allocation2 + $0xf0] sm:$0xff]  ;;  %v71_v22 = vlaneseq }
  0x25   :  { %v168_v1 = vld [vmem:[#allocation2 + $0x78] sm:$0xff]  ;;  %1123 = vmatprep.subr.mxu0 %v185_v0  ;;  %v167_v3 = vld [vmem:[#allocation2 + $0x70] sm:$0xff]  ;;  %v183_v4 = vld [vmem:[#allocation2 + $0xe8] sm:$0xff] }
  0x26   :  { %1161 = vmatprep.subr.mxu1 %v168_v1  ;;  %1124 = vmatpush3.msra.mxu0 %v185_v0  ;;  %v166_v5 = vld [vmem:[#allocation2 + $0x68] sm:$0xff]  ;;  %v182_v6 = vld [vmem:[#allocation2 + $0xe0] sm:$0xff]  ;;  %v181_v8 = vld [vmem:[#allocation2 + $0xd8] sm:$0xff]  ;;  %v1544_v27 = vshrl.u32 %v71_v22, 7 }
  0x27   :  { %1162 = vmatpush3.msra.mxu1 %v168_v1  ;;  %1125 = vmatprep.subr.mxu0 %v184_v2  ;;  %v165_v7 = vld [vmem:[#allocation2 + $0x60] sm:$0xff]  ;;  %v164_v9 = vld [vmem:[#allocation2 + $0x58] sm:$0xff]  ;;  %v180_v10 = vld [vmem:[#allocation2 + $0xd0] sm:$0xff] }
  0x28   :  { %1163 = vmatprep.subr.mxu1 %v167_v3  ;;  %1126 = vmatpush3.msra.mxu0 %v184_v2  ;;  %v163_v11 = vld [vmem:[#allocation2 + $0x50] sm:$0xff]  ;;  %v179_v12 = vld [vmem:[#allocation2 + $0xc8] sm:$0xff]  ;;  %v178_v14 = vld [vmem:[#allocation2 + $0xc0] sm:$0xff]  ;;  %v74_v33 = vadd.s32 16, %v1544_v27  ;;  %v80_v36 = vand.u32 15, %v1544_v27  ;;  %vm136_vm0 = vcmp.lt.s32.totalorder %v1544_v27, 1 }
  0x29   :  { %1164 = vmatpush3.msra.mxu1 %v167_v3  ;;  %1127 = vmatprep.subr.mxu0 %v183_v4  ;;  %v162_v13 = vld [vmem:[#allocation2 + $0x48] sm:$0xff]  ;;  %v161_v15 = vld [vmem:[#allocation2 + $0x40] sm:$0xff]  ;;  %v177_v16 = vld [vmem:[#allocation2 + $0xb8] sm:$0xff]  ;;  %vm360_vm3 = vcmp.lt.s32.totalorder %v1544_v27, 7  ;;  %v73_v3 = vadd.s32 8, %v1544_v27 }
  0x2a   :  { %1165 = vmatprep.subr.mxu1 %v166_v5  ;;  %1128 = vmatpush3.msra.mxu0 %v183_v4  ;;  %v160_v17 = vld [vmem:[#allocation2 + $0x38] sm:$0xff]  ;;  %v176_v18 = vld [vmem:[#allocation2 + $0xb0] sm:$0xff]  ;;  %v175_v20 = vld [vmem:[#allocation2 + $0xa8] sm:$0xff]  ;;  %v94_v44 = vand.u32 15, %v74_v33  ;;  %vm1573_vm1 = vcmp.ne.s32.totalorder %v80_v36, 0 }
  0x2b   :  { %1166 = vmatpush3.msra.mxu1 %v166_v5  ;;  %1129 = vmatprep.subr.mxu0 %v182_v6  ;;  %v159_v19 = vld [vmem:[#allocation2 + $0x30] sm:$0xff]  ;;  %v158_v21 = vld [vmem:[#allocation2 + $0x28] sm:$0xff]  ;;  %v174_v23 = vld [vmem:[#allocation2 + $0xa0] sm:$0xff] }
  0x2c   :  { %1167 = vmatprep.subr.mxu1 %v165_v7  ;;  %1130 = vmatpush3.msra.mxu0 %v182_v6  ;;  %v157_v24 = vld [vmem:[#allocation2 + $0x20] sm:$0xff]  ;;  %v173_v25 = vld [vmem:[#allocation2 + $0x98] sm:$0xff]  ;;  %v172_v30 = vld [vmem:[#allocation2 + $0x90] sm:$0xff]  ;;  %vm1584_vm2 = vcmp.ne.s32.totalorder %v94_v44, 0 }
  0x2d   :  { %1168 = vmatpush3.msra.mxu1 %v165_v7  ;;  %1131 = vmatprep.subr.mxu0 %v181_v8  ;;  %v156_v26 = vld [vmem:[#allocation2 + $0x18] sm:$0xff]  ;;  %v1549_v28 = vld [vmem:[%s1775_s0] sm:$0xff]  ;;  %v155_v31 = vld [vmem:[#allocation2 + $0x10] sm:$0xff]  ;;  %v87_v7 = vand.u32 15, %v73_v3 }
  0x2e   :  { %1169 = vmatprep.subr.mxu1 %v164_v9  ;;  %1132 = vmatpush3.msra.mxu0 %v181_v8  ;;  %v1554_v29 = vld [vmem:[%s1775_s0 + $0x18] sm:$0xff]  ;;  %v1559_v32 = vld [vmem:[%s1775_s0 + $0x8] sm:$0xff]  ;;  %v132_v37 = vrot.slane %v1549_v28, 7  ;;  %v1568_v39 = vld [vmem:[%s1775_s0 + $0x10] sm:$0xff]  ;;  %v356_v51 = vrot.slane %v1549_v28, 1  ;;  %v75_v8 = vadd.s32 24, %v1544_v27 }
  0x2f   :  { %1170 = vmatpush3.msra.mxu1 %v164_v9  ;;  %1133 = vmatprep.subr.mxu0 %v180_v10  ;;  %v171_v34 = vld [vmem:[#allocation2 + $0x88] sm:$0xff]  ;;  %v135_v38 = vrot.slane %v1554_v29, 7  ;;  %v133_v40 = vrot.slane %v1559_v32, 7  ;;  %v170_v41 = vld [vmem:[#allocation2 + $0x80] sm:$0xff]  ;;  %v134_v43 = vrot.slane %v1568_v39, 7  ;;  %v393_v48 = vld [vmem:[#allocation2 + $0x178] sm:$0xff] }
  0x30   :  { %1171 = vmatprep.subr.mxu1 %v163_v11  ;;  %1134 = vmatpush3.msra.mxu0 %v180_v10  ;;  %v154_v35 = vld [vmem:[#allocation2 + $0x8] sm:$0xff]  ;;  %v153_v42 = vld [vmem:[#allocation2] sm:$0xff]  ;;  %v357_v52 = vrot.slane %v1559_v32, 1  ;;  %v392_v53 = vld [vmem:[#allocation2 + $0x170] sm:$0xff]  ;;  %v358_v5 = vrot.slane %v1568_v39, 1  ;;  %v359_v9 = vrot.slane %v1554_v29, 1 }
  0x31   :  { %1172 = vmatpush3.msra.mxu1 %v163_v11  ;;  %1135 = vmatprep.subr.mxu0 %v179_v12  ;;  %v140_v46 = vsel %vm136_vm0, %v135_v38, %v132_v37  ;;  %v139_v47 = vsel %vm136_vm0, %v132_v37, %v133_v40  ;;  %v138_v50 = vsel %vm136_vm0, %v133_v40, %v134_v43  ;;  %v391_v55 = vld [vmem:[#allocation2 + $0x168] sm:$0xff]  ;;  %v390_v57 = vld [vmem:[#allocation2 + $0x160] sm:$0xff]  ;;  %v389_v58 = vld [vmem:[#allocation2 + $0x158] sm:$0xff]  ;;  %vm1610_vm4 = vcmp.ne.s32.totalorder %v87_v7, 15 }
  0x32   :  { %1173 = vmatprep.subr.mxu1 %v162_v13  ;;  %1136 = vmatpush3.msra.mxu0 %v179_v12  ;;  %v137_v54 = vsel %vm136_vm0, %v134_v43, %v135_v38  ;;  %v363_v56 = vsel %vm360_vm3, %v356_v51, %v357_v52  ;;  %v388_v59 = vld [vmem:[#allocation2 + $0x150] sm:$0xff]  ;;  %v387_v60 = vld [vmem:[#allocation2 + $0x148] sm:$0xff]  ;;  %v386_v61 = vld [vmem:[#allocation2 + $0x140] sm:$0xff]  ;;  %v362_v12 = vsel %vm360_vm3, %v357_v52, %v358_v5 }
  0x33   :  { %1174 = vmatpush3.msra.mxu1 %v162_v13  ;;  %1137 = vmatprep.subr.mxu0 %v178_v14  ;;  %v385_v62 = vld [vmem:[#allocation2 + $0x138] sm:$0xff]  ;;  %v384_v63 = vld [vmem:[#allocation2 + $0x130] sm:$0xff]  ;;  %v383_v0 = vld [vmem:[#allocation2 + $0x128] sm:$0xff]  ;;  %v101_v13 = vand.u32 15, %v75_v8 }
  0x34   :  { %1175 = vmatprep.subr.mxu1 %v161_v15  ;;  %1138 = vmatpush3.msra.mxu0 %v178_v14  ;;  %v382_v1 = vld [vmem:[#allocation2 + $0x120] sm:$0xff]  ;;  %v381_v2 = vld [vmem:[#allocation2 + $0x118] sm:$0xff]  ;;  %v380_v4 = vld [vmem:[#allocation2 + $0x110] sm:$0xff]  ;;  %v361_v14 = vsel %vm360_vm3, %v358_v5, %v359_v9 }
  0x35   :  { %1176 = vmatpush3.msra.mxu1 %v161_v15  ;;  %1139 = vmatprep.subr.mxu0 %v177_v16  ;;  %v379_v6 = vld [vmem:[#allocation2 + $0x108] sm:$0xff]  ;;  %v378_v10 = vld [vmem:[#allocation2 + $0x100] sm:$0xff]  ;;  %vm1622_vm5 = vcmp.ne.s32.totalorder %v101_v13, 15  ;;  %v534_v37 = vld [vmem:[#allocation4 + $0xb8] sm:$0xff] }
  0x36   :  { %1177 = vmatprep.subr.mxu1 %v160_v17  ;;  %1140 = vmatpush3.msra.mxu0 %v177_v16  ;;  %v364_v16 = vsel %vm360_vm3, %v359_v9, %v356_v51  ;;  %v523_v22 = vld [vmem:[#allocation4 + $0x68] sm:$0xff]  ;;  %v518_v36 = vld [vmem:[#allocation4 + $0x40] sm:$0xff]  ;;  %v517_v38 = vld [vmem:[#allocation4 + $0x38] sm:$0xff] }
  0x37   :  { %1178 = vmatpush3.msra.mxu1 %v160_v17  ;;  %1141 = vmatprep.subr.mxu0 %v176_v18  ;;  %v542_v17 = vld [vmem:[#allocation4 + $0xf8] sm:$0xff]  ;;  %v536_v33 = vld [vmem:[#allocation4 + $0xc8] sm:$0xff]  ;;  %v533_v40 = vld [vmem:[#allocation4 + $0xb0] sm:$0xff] }
  0x38   :  { %1179 = vmatprep.subr.mxu1 %v159_v19  ;;  %1142 = vmatpush3.msra.mxu0 %v176_v18  ;;  %v541_v18 = vld [vmem:[#allocation4 + $0xf0] sm:$0xff]  ;;  %v530_v44 = vld [vmem:[#allocation4 + $0x98] sm:$0xff]  ;;  %v527_v52 = vld [vmem:[#allocation4 + $0x80] sm:$0xff] }
  0x39   :  { %1180 = vmatpush3.msra.mxu1 %v159_v19  ;;  %1143 = vmatprep.subr.mxu0 %v175_v20  ;;  %v525_v19 = vld [vmem:[#allocation4 + $0x78] sm:$0xff]  ;;  %v516_v43 = vld [vmem:[#allocation4 + $0x30] sm:$0xff]  ;;  %v976_v5 = vld [vmem:[%s1779_s4] ss:$0 sm:$0xff] }
  0x3a   :  { %1181 = vmatprep.subr.mxu1 %v158_v21  ;;  %1144 = vmatpush3.msra.mxu0 %v175_v20  ;;  %v524_v20 = vld [vmem:[#allocation4 + $0x70] sm:$0xff]  ;;  %v513_v51 = vld [vmem:[#allocation4 + $0x18] sm:$0xff]  ;;  %v735_v49 = vld [vmem:[#allocation4 + $0x148] sm:$0xff] }
  0x3b   :  { %1182 = vmatpush3.msra.mxu1 %v158_v21  ;;  %1145 = vmatprep.subr.mxu0 %v174_v23  ;;  %v540_v21 = vld [vmem:[#allocation4 + $0xe8] sm:$0xff]  ;;  %v737_v45 = vld [vmem:[#allocation4 + $0x158] sm:$0xff] }
  0x3c   :  { %1183 = vmatprep.subr.mxu1 %v157_v24  ;;  %1146 = vmatpush3.msra.mxu0 %v174_v23  ;;  %v539_v23 = vld [vmem:[#allocation4 + $0xe0] sm:$0xff] }
  0x3d   :  { %1184 = vmatpush3.msra.mxu1 %v157_v24  ;;  %1147 = vmatprep.subr.mxu0 %v173_v25  ;;  %v522_v24 = vld [vmem:[#allocation4 + $0x60] sm:$0xff] }
  0x3e   :  { %1185 = vmatprep.subr.mxu1 %v156_v26  ;;  %1148 = vmatpush3.msra.mxu0 %v173_v25  ;;  %v538_v25 = vld [vmem:[#allocation4 + $0xd8] sm:$0xff] }
  0x3f   :  { %1186 = vmatpush3.msra.mxu1 %v156_v26  ;;  %1149 = vmatprep.subr.mxu0 %v172_v30  ;;  %v521_v26 = vld [vmem:[#allocation4 + $0x58] sm:$0xff] }
  0x40   :  { %1187 = vmatprep.subr.mxu1 %v155_v31  ;;  %1150 = vmatpush3.msra.mxu0 %v172_v30  ;;  %v537_v30 = vld [vmem:[#allocation4 + $0xd0] sm:$0xff] }
  0x41   :  { %1188 = vmatpush3.msra.mxu1 %v155_v31  ;;  %1151 = vmatprep.subr.mxu0 %v171_v34  ;;  %v520_v31 = vld [vmem:[#allocation4 + $0x50] sm:$0xff] }
  0x42   :  { %1189 = vmatprep.subr.mxu1 %v154_v35  ;;  %1152 = vmatpush3.msra.mxu0 %v171_v34  ;;  %v519_v34 = vld [vmem:[#allocation4 + $0x48] sm:$0xff] }
  0x43   :  { %1190 = vmatpush3.msra.mxu1 %v154_v35  ;;  %1153 = vmatprep.subr.mxu0 %v170_v41  ;;  %v535_v35 = vld [vmem:[#allocation4 + $0xc0] sm:$0xff] }
  0x44   :  { %1191 = vmatprep.subr.mxu1 %v153_v42  ;;  %1154 = vmatpush3.msra.mxu0 %v170_v41  ;;  %v532_v41 = vld [vmem:[#allocation4 + $0xa8] sm:$0xff] }
  0x45   :  { %1155 = vmatprep.mubr.f32.mxu0 %v1549_v28  ;;  %1192 = vmatpush3.msra.mxu1 %v153_v42  ;;  %v531_v42 = vld [vmem:[#allocation4 + $0xa0] sm:$0xff] }
  0x46   :  { %1193 = vmatprep.mubr.msk.f32.mxu1 %vm1573_vm1, %v140_v46  ;;  %1156 = vmatmul.mubr.f32.vlgmr.msra.gmra.mxu0 %v1559_v32  ;;  %v515_v46 = vld [vmem:[#allocation4 + $0x28] sm:$0xff] }
  0x47   :  { %1194 = vmatmul.mubr.f32.vlgmr.msra.gmra.mxu1 %v139_v47  ;;  %1199 = vmatprep.subr.mxu0 %v393_v48  ;;  %v529_v47 = vld [vmem:[#allocation4 + $0x90] sm:$0xff] }
  0x48   :  { %1158 = vmatprep.mubr.f32.mxu0 %v1568_v39  ;;  %1200 = vmatpush3.msra.mxu0 %v393_v48  ;;  %v514_v48 = vld [vmem:[#allocation4 + $0x20] sm:$0xff] }
  0x49   :  { %1196 = vmatprep.mubr.msk.f32.mxu1 %vm1584_vm2, %v138_v50  ;;  %1201 = vmatprep.subr.mxu0 %v392_v53  ;;  %v528_v50 = vld [vmem:[#allocation4 + $0x88] sm:$0xff] }
  0x4a   :  { %1202 = vmatpush3.msra.mxu0 %v392_v53  ;;  %1237 = vmatprep.subr.mxu1 %v542_v17  ;;  %v512_v53 = vld [vmem:[#allocation4 + $0x10] sm:$0xff] }
  0x4b   :  { %1197 = vmatmul.mubr.f32.gmra.mxu1 %v137_v54  ;;  %1203 = vmatprep.subr.mxu0 %v391_v55  ;;  %v741_v54 = vld [vmem:[#allocation4 + $0x178] sm:$0xff] }
  0x4c   :  { %1159 = vmatmul.mubr.f32.gmra.mxu0 %v1554_v29  ;;  %1238 = vmatpush3.msra.mxu1 %v542_v17 }
  0x4d   :  { %1204 = vmatpush3.msra.mxu0 %v391_v55  ;;  %1231 = vmatprep.mubr.f32.mxu0 %v363_v56  ;;  %v511_v55 = vld [vmem:[#allocation4 + $0x8] sm:$0xff]  ;;  %v510_v56 = vld [vmem:[#allocation4] sm:$0xff] }
  0x4e   :  { %1205 = vmatprep.subr.mxu0 %v390_v57  ;;  %1239 = vmatprep.subr.mxu1 %v541_v18 }
  0x4f   :  { %1206 = vmatpush3.msra.mxu0 %v390_v57  ;;  %1240 = vmatpush3.msra.mxu1 %v541_v18  ;;  %v1632_v57 = vld [vmem:[#allocation6 + $0x78] sm:$0xff] }
  0x50   :  { %1207 = vmatprep.subr.mxu0 %v389_v58  ;;  %1241 = vmatprep.subr.mxu1 %v540_v21 }
  0x51   :  { %1208 = vmatpush3.msra.mxu0 %v389_v58  ;;  %1242 = vmatpush3.msra.mxu1 %v540_v21 }
  0x52   :  { %1209 = vmatprep.subr.mxu0 %v388_v59  ;;  %1243 = vmatprep.subr.mxu1 %v539_v23 }
  0x53   :  { %1210 = vmatpush3.msra.mxu0 %v388_v59  ;;  %1244 = vmatpush3.msra.mxu1 %v539_v23 }
  0x54   :  { %1211 = vmatprep.subr.mxu0 %v387_v60  ;;  %1245 = vmatprep.subr.mxu1 %v538_v25 }
  0x55   :  { %1212 = vmatpush3.msra.mxu0 %v387_v60  ;;  %1246 = vmatpush3.msra.mxu1 %v538_v25 }
  0x56   :  { %1213 = vmatprep.subr.mxu0 %v386_v61  ;;  %1247 = vmatprep.subr.mxu1 %v537_v30 }
  0x57   :  { %1214 = vmatpush3.msra.mxu0 %v386_v61  ;;  %1248 = vmatpush3.msra.mxu1 %v537_v30 }
  0x58   :  { %1215 = vmatprep.subr.mxu0 %v385_v62  ;;  %1249 = vmatprep.subr.mxu1 %v536_v33 }
  0x59   :  { %1216 = vmatpush3.msra.mxu0 %v385_v62  ;;  %1250 = vmatpush3.msra.mxu1 %v536_v33 }
  0x5a   :  { %1217 = vmatprep.subr.mxu0 %v384_v63  ;;  %1251 = vmatprep.subr.mxu1 %v535_v35 }
  0x5b   :  { %1218 = vmatpush3.msra.mxu0 %v384_v63  ;;  %1252 = vmatpush3.msra.mxu1 %v535_v35 }
  0x5c   :  { %1219 = vmatprep.subr.mxu0 %v383_v0  ;;  %1253 = vmatprep.subr.mxu1 %v534_v37 }
  0x5d   :  { %1220 = vmatpush3.msra.mxu0 %v383_v0  ;;  %1254 = vmatpush3.msra.mxu1 %v534_v37  ;;  %v738_v37 = vld [vmem:[#allocation4 + $0x160] sm:$0xff] }
  0x5e   :  { %1221 = vmatprep.subr.mxu0 %v382_v1  ;;  %1255 = vmatprep.subr.mxu1 %v533_v40 }
  0x5f   :  { %1222 = vmatpush3.msra.mxu0 %v382_v1  ;;  %1256 = vmatpush3.msra.mxu1 %v533_v40 }
  0x60   :  { %1223 = vmatprep.subr.mxu0 %v381_v2  ;;  %1257 = vmatprep.subr.mxu1 %v532_v41 }
  0x61   :  { %1224 = vmatpush3.msra.mxu0 %v381_v2  ;;  %1258 = vmatpush3.msra.mxu1 %v532_v41 }
  0x62   :  { %1225 = vmatprep.subr.mxu0 %v380_v4  ;;  %1259 = vmatprep.subr.mxu1 %v531_v42 }
  0x63   :  { %1226 = vmatpush3.msra.mxu0 %v380_v4  ;;  %1260 = vmatpush3.msra.mxu1 %v531_v42 }
  0x64   :  { %1227 = vmatprep.subr.mxu0 %v379_v6  ;;  %1261 = vmatprep.subr.mxu1 %v530_v44 }
  0x65   :  { %1228 = vmatpush3.msra.mxu0 %v379_v6  ;;  %1262 = vmatpush3.msra.mxu1 %v530_v44  ;;  %v1675_v44 = vld [vmem:[#allocation6 + $0x68] sm:$0xff] }
  0x66   :  { %1229 = vmatprep.subr.mxu0 %v378_v10  ;;  %1263 = vmatprep.subr.mxu1 %v529_v47 }
  0x67   :  { %1230 = vmatpush3.msra.mxu0 %v378_v10  ;;  %1264 = vmatpush3.msra.mxu1 %v529_v47 }
  0x68   :  { %1232 = vmatmul.mubr.msk.f32.vlgmr.msra.gmra.mxu0 %vm1610_vm4, %v362_v12  ;;  %1275 = vmatprep.subr.mxu0 %v525_v19 }
  0x69   :  { %1234 = vmatprep.mubr.f32.mxu0 %v361_v14  ;;  %1276 = vmatpush3.msra.mxu0 %v525_v19 }
  0x6a   :  { %1277 = vmatprep.subr.mxu0 %v524_v20  ;;  %1265 = vmatprep.subr.mxu1 %v528_v50 }
  0x6b   :  { %1278 = vmatpush3.msra.mxu0 %v524_v20  ;;  %1266 = vmatpush3.msra.mxu1 %v528_v50  ;;  %v1685_v50 = vld [vmem:[#allocation6 + $0x58] sm:$0xff] }
  0x6c   :  { %1235 = vmatmul.mubr.msk.f32.gmra.mxu0 %vm1622_vm5, %v364_v16  ;;  %1279 = vmatprep.subr.mxu0 %v523_v22 }
  0x6d   :  { %1280 = vmatpush3.msra.mxu0 %v523_v22  ;;  %1267 = vmatprep.subr.mxu1 %v527_v52 }
  0x6e   :  { %1281 = vmatprep.subr.mxu0 %v522_v24  ;;  %1268 = vmatpush3.msra.mxu1 %v527_v52  ;;  %v1689_v52 = vld [vmem:[#allocation6 + $0x50] sm:$0xff] }
  0x6f   :  { %1282 = vmatpush3.msra.mxu0 %v522_v24  ;;  %1313 = vmatprep.subr.mxu1 %v741_v54  ;;  %v740_v24 = vld [vmem:[#allocation4 + $0x170] sm:$0xff] }
  0x70   :  { %1283 = vmatprep.subr.mxu0 %v521_v26 }
  0x71   :  { %1284 = vmatpush3.msra.mxu0 %v521_v26 }
  0x72   :  { %1285 = vmatprep.subr.mxu0 %v520_v31 }
  0x73   :  { %1286 = vmatpush3.msra.mxu0 %v520_v31  ;;  %v739_v31 = vld [vmem:[#allocation4 + $0x168] sm:$0xff] }
  0x74   :  { %1287 = vmatprep.subr.mxu0 %v519_v34 }
  0x75   :  { %1288 = vmatpush3.msra.mxu0 %v519_v34 }
  0x76   :  { %1289 = vmatprep.subr.mxu0 %v518_v36 }
  0x77   :  { %1290 = vmatpush3.msra.mxu0 %v518_v36 }
  0x78   :  { %1291 = vmatprep.subr.mxu0 %v517_v38 }
  0x79   :  { %1292 = vmatpush3.msra.mxu0 %v517_v38 }
  0x7a   :  { %1293 = vmatprep.subr.mxu0 %v516_v43 }
  0x7b   :  { %1294 = vmatpush3.msra.mxu0 %v516_v43  ;;  %v1670_v43 = vld [vmem:[#allocation6 + $0x70] sm:$0xff] }
  0x7c   :  { %1295 = vmatprep.subr.mxu0 %v515_v46 }
  0x7d   :  { %1296 = vmatpush3.msra.mxu0 %v515_v46  ;;  %v736_v46 = vld [vmem:[#allocation4 + $0x150] sm:$0xff] }
  0x7e   :  { %1297 = vmatprep.subr.mxu0 %v514_v48 }
  0x7f   :  { %1298 = vmatpush3.msra.mxu0 %v514_v48  ;;  %v1681_v48 = vld [vmem:[#allocation6 + $0x60] sm:$0xff] }
  0x80   :  { %1299 = vmatprep.subr.mxu0 %v513_v51 }
  0x81   :  { %1300 = vmatpush3.msra.mxu0 %v513_v51  ;;  %v734_v51 = vld [vmem:[#allocation4 + $0x140] sm:$0xff] }
  0x82   :  { %1301 = vmatprep.subr.mxu0 %v512_v53 }
  0x83   :  { %1302 = vmatpush3.msra.mxu0 %v512_v53  ;;  %v733_v53 = vld [vmem:[#allocation4 + $0x138] sm:$0xff] }
  0x84   :  { %1303 = vmatprep.subr.mxu0 %v511_v55 }
  0x85   :  { %1304 = vmatpush3.msra.mxu0 %v511_v55  ;;  %v732_v55 = vld [vmem:[#allocation4 + $0x130] sm:$0xff] }
  0x86   :  { %1305 = vmatprep.subr.mxu0 %v510_v56 }
  0x87   :  { %1306 = vmatpush3.msra.mxu0 %v510_v56  ;;  %v1697_v56 = vld [vmem:[#allocation6 + $0x40] sm:$0xff] }
  0x88   :  { %1351 = vmatprep.subr.mxu0 %v1632_v57 }
 0x106   :  { %v1157_v58 = vpop.f32.mrf.mxu0 }
 0x107   :  { %v1195_v59 = vpop.f32.mrf.mxu1 }
 0x108   :  { %v252_v60 = vpop.f32.mrf.mxu0  ;;  %v343_v1 = vadd.f32 %v1195_v59, %v1157_v58  ;;  %v731_v58 = vld [vmem:[#allocation4 + $0x128] sm:$0xff]  ;;  %v1701_v59 = vld [vmem:[#allocation6 + $0x38] sm:$0xff] }
 0x109   :  { %v337_v62 = vpop.f32.mrf.mxu1 }
 0x10a   :  { %v338_v3 = vadd.f32 %v337_v62, %v252_v60  ;;  %v730_v60 = vld [vmem:[#allocation4 + $0x120] sm:$0xff]  ;;  %v729_v62 = vld [vmem:[#allocation4 + $0x118] sm:$0xff] }
 0x10b   :  { %v1198_v63 = vpop.f32.mrf.mxu1 }
 0x10c   :  { %v1160_v61 = vpop.f32.mrf.mxu0 }
 0x10d   :  { %v347_v6 = vpop.f32.mrf.mxu1  ;;  %v353_v8 = vadd.f32 %v1198_v63, %v1160_v61  ;;  %v1705_v61 = vld [vmem:[#allocation6 + $0x30] sm:$0xff]  ;;  %v1709_v63 = vld [vmem:[#allocation6 + $0x28] sm:$0xff] }
 0x10e   :  { %v262_v0 = vpop.f32.mrf.mxu0 }
 0x10f   :  { %v348_v13 = vadd.f32 %v347_v6, %v262_v0  ;;  %v728_v0 = vld [vmem:[#allocation4 + $0x110] sm:$0xff] }
 0x110   :  { %v844_v6 = vld [vmem:[#allocation6 + $0x10] sm:$0xff] }
 0x128   :  { %v1233_v2 = vpop.f32.mrf.mxu0 }
 0x129   :  { %v480_v4 = vadd.f32 %v1233_v2, %v343_v1  ;;  %v846_v1 = vld [vmem:[#allocation6 + $0x20] sm:$0xff]  ;;  %v727_v2 = vld [vmem:[#allocation4 + $0x108] sm:$0xff] }
 0x12a   :  { %v460_v7 = vpop.f32.mrf.mxu0 }
 0x12b   :  { %v479_v9 = vadd.f32 %v460_v7, %v338_v3  ;;  %v491_v10 = vadd.f32 %v976_v5, %v480_v4  ;;  %v845_v3 = vld [vmem:[#allocation6 + $0x18] sm:$0xff] }
 0x12c   :  { %v1236_v12 = vpop.f32.mrf.mxu0 }
 0x12d   :  { %v490_v14 = vadd.f32 %v976_v5, %v479_v9  ;;  %v482_v16 = vadd.f32 %v1236_v12, %v353_v8  ;;  %v1640_v21 = vmax.f32 %v491_v10, 0.0  ;;  %v843_v9 = vld [vmem:[#allocation6 + $0x8] sm:$0xff]  ;;  %v842_v12 = vld [vmem:[#allocation6] sm:$0xff] }
 0x12e   :  { %v470_v17 = vpop.f32.mrf.mxu0 }
 0x12f   :  { %v1638_v18 = vmax.f32 %v490_v14, 0.0  ;;  %v493_v19 = vadd.f32 %v976_v5, %v482_v16  ;;  %v481_v20 = vadd.f32 %v470_v17, %v348_v13  ;;  %v499_v34 = vrot.slane %v1640_v21, 7 }
 0x130   :  { %v714_v38 = vrot.slane %v1640_v21, 1 }
 0x131   :  { %v1642_v22 = vmax.f32 %v493_v19, 0.0  ;;  %v492_v23 = vadd.f32 %v976_v5, %v481_v20  ;;  %1269 = vmatprep.mubr.f32.mxu1 %v1638_v18  ;;  %v498_v25 = vrot.slane %v1638_v18, 7  ;;  %v713_v33 = vrot.slane %v1638_v18, 1  ;;  %v726_v5 = vld [vmem:[#allocation4 + $0x100] sm:$0xff] }
 0x132   :  { %1270 = vmatmul.mubr.f32.vlgmr.msra.gmra.mxu1 %v1640_v21  ;;  %v981_v19 = vld [vmem:[%s1780_s5] ss:$0 sm:$0xff] }
 0x133   :  { %v501_v26 = vrot.slane %v1642_v22, 7  ;;  %v1648_v30 = vmax.f32 %v492_v23, 0.0  ;;  %1314 = vmatpush3.msra.mxu1 %v741_v54  ;;  %v504_v40 = vsel %vm136_vm0, %v498_v25, %v499_v34  ;;  %v719_v42 = vsel %vm360_vm3, %v713_v33, %v714_v38  ;;  %v1693_v54 = vld [vmem:[#allocation6 + $0x48] sm:$0xff] }
 0x134   :  { %1315 = vmatprep.subr.mxu1 %v740_v24  ;;  %v716_v7 = vrot.slane %v1642_v22, 1 }
 0x135   :  { %v500_v35 = vrot.slane %v1648_v30, 7  ;;  %1316 = vmatpush3.msra.mxu1 %v740_v24  ;;  %1272 = vmatprep.mubr.f32.mxu1 %v1648_v30  ;;  %v505_v36 = vsel %vm136_vm0, %v501_v26, %v498_v25  ;;  %v715_v4 = vrot.slane %v1648_v30, 1  ;;  %v982_v25 = vld [vmem:[%s1781_s6] ss:$0 sm:$0xff] }
 0x136   :  { %1317 = vmatprep.subr.mxu1 %v739_v31  ;;  %1273 = vmatmul.mubr.f32.gmra.mxu1 %v1642_v22  ;;  %v720_v11 = vsel %vm360_vm3, %v716_v7, %v713_v33 }
 0x137   :  { %1307 = vmatprep.mubr.msk.f32.mxu0 %vm1573_vm1, %v505_v36  ;;  %1318 = vmatpush3.msra.mxu1 %v739_v31  ;;  %v503_v41 = vsel %vm136_vm0, %v499_v34, %v500_v35  ;;  %v502_v47 = vsel %vm136_vm0, %v500_v35, %v501_v26  ;;  %v718_v8 = vsel %vm360_vm3, %v714_v38, %v715_v4 }
 0x138   :  { %1308 = vmatmul.mubr.f32.vlgmr.msra.gmra.mxu0 %v504_v40  ;;  %1319 = vmatprep.subr.mxu1 %v738_v37  ;;  %v717_v10 = vsel %vm360_vm3, %v715_v4, %v716_v7 }
 0x139   :  { %1345 = vmatprep.mubr.f32.mxu1 %v719_v42  ;;  %1352 = vmatpush3.msra.mxu0 %v1632_v57 }
 0x13a   :  { %1310 = vmatprep.mubr.msk.f32.mxu0 %vm1584_vm2, %v503_v41  ;;  %1320 = vmatpush3.msra.mxu1 %v738_v37 }
 0x13b   :  { %1353 = vmatprep.subr.mxu0 %v1670_v43  ;;  %1321 = vmatprep.subr.mxu1 %v737_v45 }
 0x13c   :  { %1354 = vmatpush3.msra.mxu0 %v1670_v43  ;;  %1322 = vmatpush3.msra.mxu1 %v737_v45 }
 0x13d   :  { %1355 = vmatprep.subr.mxu0 %v1675_v44  ;;  %1311 = vmatmul.mubr.f32.gmra.mxu0 %v502_v47 }
 0x13e   :  { %1323 = vmatprep.subr.mxu1 %v736_v46  ;;  %1356 = vmatpush3.msra.mxu0 %v1675_v44 }
 0x13f   :  { %1324 = vmatpush3.msra.mxu1 %v736_v46  ;;  %1357 = vmatprep.subr.mxu0 %v1681_v48 }
 0x140   :  { %1325 = vmatprep.subr.mxu1 %v735_v49  ;;  %1358 = vmatpush3.msra.mxu0 %v1681_v48 }
 0x141   :  { %1326 = vmatpush3.msra.mxu1 %v735_v49  ;;  %1359 = vmatprep.subr.mxu0 %v1685_v50 }
 0x142   :  { %1327 = vmatprep.subr.mxu1 %v734_v51  ;;  %1360 = vmatpush3.msra.mxu0 %v1685_v50 }
 0x143   :  { %1328 = vmatpush3.msra.mxu1 %v734_v51  ;;  %1361 = vmatprep.subr.mxu0 %v1689_v52 }
 0x144   :  { %1329 = vmatprep.subr.mxu1 %v733_v53  ;;  %1362 = vmatpush3.msra.mxu0 %v1689_v52 }
 0x145   :  { %1330 = vmatpush3.msra.mxu1 %v733_v53  ;;  %1363 = vmatprep.subr.mxu0 %v1693_v54 }
 0x146   :  { %1331 = vmatprep.subr.mxu1 %v732_v55  ;;  %1364 = vmatpush3.msra.mxu0 %v1693_v54 }
 0x147   :  { %1332 = vmatpush3.msra.mxu1 %v732_v55  ;;  %1365 = vmatprep.subr.mxu0 %v1697_v56 }
 0x148   :  { %1333 = vmatprep.subr.mxu1 %v731_v58  ;;  %1366 = vmatpush3.msra.mxu0 %v1697_v56 }
 0x149   :  { %1334 = vmatpush3.msra.mxu1 %v731_v58  ;;  %1367 = vmatprep.subr.mxu0 %v1701_v59 }
 0x14a   :  { %1335 = vmatprep.subr.mxu1 %v730_v60  ;;  %1368 = vmatpush3.msra.mxu0 %v1701_v59 }
 0x14b   :  { %1336 = vmatpush3.msra.mxu1 %v730_v60  ;;  %1369 = vmatprep.subr.mxu0 %v1705_v61 }
 0x14c   :  { %1337 = vmatprep.subr.mxu1 %v729_v62  ;;  %1370 = vmatpush3.msra.mxu0 %v1705_v61 }
 0x14d   :  { %1338 = vmatpush3.msra.mxu1 %v729_v62  ;;  %1371 = vmatprep.subr.mxu0 %v1709_v63 }
 0x14e   :  { %1339 = vmatprep.subr.mxu1 %v728_v0  ;;  %1372 = vmatpush3.msra.mxu0 %v1709_v63 }
 0x14f   :  { %1340 = vmatpush3.msra.mxu1 %v728_v0  ;;  %1373 = vmatprep.subr.mxu0 %v846_v1 }
 0x150   :  { %1341 = vmatprep.subr.mxu1 %v727_v2  ;;  %1374 = vmatpush3.msra.mxu0 %v846_v1 }
 0x151   :  { %1342 = vmatpush3.msra.mxu1 %v727_v2  ;;  %1375 = vmatprep.subr.mxu0 %v845_v3 }
 0x152   :  { %1343 = vmatprep.subr.mxu1 %v726_v5  ;;  %1376 = vmatpush3.msra.mxu0 %v845_v3 }
 0x153   :  { %1344 = vmatpush3.msra.mxu1 %v726_v5  ;;  %1377 = vmatprep.subr.mxu0 %v844_v6 }
 0x154   :  { %1346 = vmatmul.mubr.msk.f32.vlgmr.msra.gmra.mxu1 %vm1610_vm4, %v718_v8  ;;  %1389 = vmatprep.subr.mxu1 %v1632_v57 }
 0x155   :  { %1378 = vmatpush3.msra.mxu0 %v844_v6  ;;  %1348 = vmatprep.mubr.f32.mxu1 %v717_v10 }
 0x156   :  { %1405 = vmatpush3.msra.mxu1 %v1632_v57  ;;  %1379 = vmatprep.subr.mxu0 %v843_v9 }
 0x157   :  { %1390 = vmatprep.subr.mxu1 %v1670_v43  ;;  %1380 = vmatpush3.msra.mxu0 %v843_v9 }
 0x158   :  { %1406 = vmatpush3.msra.mxu1 %v1670_v43  ;;  %1381 = vmatprep.subr.mxu0 %v842_v12 }
 0x159   :  { %1349 = vmatmul.mubr.msk.f32.gmra.mxu1 %vm1622_vm5, %v720_v11  ;;  %1391 = vmatprep.subr.mxu1 %v1675_v44 }
 0x15a   :  { %1382 = vmatpush3.msra.mxu0 %v842_v12  ;;  %1383 = vmatprep.mubr.f32.mxu0 %v1549_v28 }
 0x15b   :  { %1407 = vmatpush3.msra.mxu1 %v1675_v44  ;;  %1384 = vmatmul.mubr.f32.vlgmr.msra.gmra.mxu0 %v1559_v32 }
 0x15c   :  { %1392 = vmatprep.subr.mxu1 %v1681_v48  ;;  %1386 = vmatprep.mubr.f32.mxu1 %v1568_v39 }
 0x15d   :  { %1408 = vmatpush3.msra.mxu1 %v1681_v48 }
 0x15e   :  { %1393 = vmatprep.subr.mxu1 %v1685_v50 }
 0x15f   :  { %1409 = vmatpush3.msra.mxu1 %v1685_v50 }
 0x160   :  { %1394 = vmatprep.subr.mxu1 %v1689_v52 }
 0x161   :  { %1410 = vmatpush3.msra.mxu1 %v1689_v52 }
 0x162   :  { %1395 = vmatprep.subr.mxu1 %v1693_v54 }
 0x163   :  { %1411 = vmatpush3.msra.mxu1 %v1693_v54 }
 0x164   :  { %1396 = vmatprep.subr.mxu1 %v1697_v56 }
 0x165   :  { %1412 = vmatpush3.msra.mxu1 %v1697_v56 }
 0x166   :  { %1397 = vmatprep.subr.mxu1 %v1701_v59 }
 0x167   :  { %1413 = vmatpush3.msra.mxu1 %v1701_v59 }
 0x168   :  { %1398 = vmatprep.subr.mxu1 %v1705_v61 }
 0x169   :  { %1414 = vmatpush3.msra.mxu1 %v1705_v61 }
 0x16a   :  { %1399 = vmatprep.subr.mxu1 %v1709_v63 }
 0x16b   :  { %1415 = vmatpush3.msra.mxu1 %v1709_v63 }
 0x16c   :  { %1400 = vmatprep.subr.mxu1 %v846_v1 }
 0x16d   :  { %1416 = vmatpush3.msra.mxu1 %v846_v1 }
 0x16e   :  { %1401 = vmatprep.subr.mxu1 %v845_v3 }
 0x16f   :  { %1417 = vmatpush3.msra.mxu1 %v845_v3 }
 0x170   :  { %1402 = vmatprep.subr.mxu1 %v844_v6 }
 0x171   :  { %1418 = vmatpush3.msra.mxu1 %v844_v6 }
 0x172   :  { %1403 = vmatprep.subr.mxu1 %v843_v9 }
 0x173   :  { %1419 = vmatpush3.msra.mxu1 %v843_v9 }
 0x174   :  { %1404 = vmatprep.subr.mxu1 %v842_v12 }
 0x175   :  { %1420 = vmatpush3.msra.mxu1 %v842_v12 }
 0x176   :  { %1387 = vmatmul.mubr.f32.vlgmr.msra.gmra.mxu1 %v1554_v29 }
 0x1f2   :  { %v1271_v27 = vpop.f32.mrf.mxu1 }
 0x1f4   :  { %v609_v28 = vpop.f32.mrf.mxu1 }
 0x1f6   :  { %v1274_v39 = vpop.f32.mrf.mxu1 }
 0x1f8   :  { %v1309_v32 = vpop.f32.mrf.mxu0  ;;  %v619_v57 = vpop.f32.mrf.mxu1 }
 0x1f9   :  { %v700_v13 = vadd.f32 %v1309_v32, %v1271_v27 }
 0x1fa   :  { %v694_v15 = vpop.f32.mrf.mxu0 }
 0x1fb   :  { %v695_v16 = vadd.f32 %v694_v15, %v609_v28 }
 0x1fd   :  { %v1312_v17 = vpop.f32.mrf.mxu0 }
 0x1fe   :  { %v710_v38 = vadd.f32 %v1312_v17, %v1274_v39 }
 0x1ff   :  { %v704_v23 = vpop.f32.mrf.mxu0 }
 0x200   :  { %v705_v41 = vadd.f32 %v704_v23, %v619_v57 }
 0x214   :  { %v1347_v14 = vpop.f32.mrf.mxu1 }
 0x215   :  { %v828_v18 = vadd.f32 %v1347_v14, %v700_v13 }
 0x216   :  { %v808_v20 = vpop.f32.mrf.mxu1 }
 0x217   :  { %v827_v21 = vadd.f32 %v808_v20, %v695_v16  ;;  %v839_v22 = vadd.f32 %v981_v19, %v828_v18 }
 0x219   :  { %v838_v29 = vadd.f32 %v981_v19, %v827_v21  ;;  %v1350_v37 = vpop.f32.mrf.mxu1 }
 0x21a   :  { %v830_v42 = vadd.f32 %v1350_v37, %v710_v38 }
 0x21b   :  { %v1385_v24 = vpop.f32.mrf.mxu0  ;;  %v818_v40 = vpop.f32.mrf.mxu1 }
 0x21c   :  { %v944_v26 = vadd.f32 %v1385_v24, %v839_v22  ;;  %v829_v43 = vadd.f32 %v818_v40, %v705_v41  ;;  %v841_v45 = vadd.f32 %v981_v19, %v830_v42 }
 0x21d   :  { %v924_v30 = vpop.f32.mrf.mxu0 }
 0x21e   :  { %v955_v31 = vadd.f32 %v982_v25, %v944_v26  ;;  %v943_v33 = vadd.f32 %v924_v30, %v838_v29  ;;  %v840_v47 = vadd.f32 %v981_v19, %v829_v43 }
 0x220   :  { %v959_v34 = vmax.f32 %v955_v31, 0.0  ;;  %v954_v35 = vadd.f32 %v982_v25, %v943_v33 }
 0x222   :  { %963 = vst [vmem:[%s1782_s7 + $0x8] sm:$0xff] %v959_v34  ;;  %v958_v36 = vmax.f32 %v954_v35, 0.0 }
 0x224   :  { %962 = vst [vmem:[%s1782_s7] sm:$0xff] %v958_v36 }
 0x236   :  { %v1388_v44 = vpop.f32.mrf.mxu1 }
 0x237   :  { %v946_v46 = vadd.f32 %v1388_v44, %v841_v45 }
 0x238   :  { %v934_v48 = vpop.f32.mrf.mxu1 }
 0x239   :  { %v957_v49 = vadd.f32 %v982_v25, %v946_v46  ;;  %v945_v50 = vadd.f32 %v934_v48, %v840_v47 }
 0x23b   :  { %v961_v51 = vmax.f32 %v957_v49, 0.0  ;;  %v956_v52 = vadd.f32 %v982_v25, %v945_v50 }
 0x23d   :  { %965 = vst [vmem:[%s1782_s7 + $0x18] sm:$0xff] %v961_v51  ;;  %v960_v53 = vmax.f32 %v956_v52, 0.0 }
 0x23f   :  { %964 = vst [vmem:[%s1782_s7 + $0x10] sm:$0xff] %v960_v53 }
 0x240   :  { %970 = vsyncpa [#allocation3], 1 }
 0x241   :  { %971 = vsyncpa [#allocation5], 1 }

</bundles_post_ra>
